<compile_context>
chip_gen: v7x
topology: tpu7x:2x2x1
jax: 0.10.0
libtpu: 0.0.40
codegen_flags: <defaults>
</compile_context>

<pallas_src>
import functools

import jax
import jax.numpy as jnp
from jax.experimental import pallas as pl
from jax.experimental.pallas import tpu as pltpu

_VMEM_LIMIT_BYTES = 32 * 1024 * 1024   # comfortable on v5e/v6e (128 MiB) and v7x (64 MiB)


def _round_up(x, m):
    return (x + m - 1) // m * m


def _pick_tiles(m, target):
    """Row-tile (multiple of 8) and grid size; keeps >=2 grid steps whenever m allows
    so dimension_semantics=("parallel",) can shard across both TensorCores on v7x."""
    if m <= 8:
        return _round_up(max(m, 1), 8), 1
    g = max(2, pl.cdiv(m, target))
    t = _round_up(pl.cdiv(m, g), 8)
    return t, pl.cdiv(m, t)


# ----------------------------- activation choices -----------------------------
def _make_act(name):
    assert name in ("relu", "lrelu", "elu")
    if name == "relu":
        return lambda x: jnp.maximum(x, 0.0)
    if name == "lrelu":
        return lambda x: jnp.where(x >= 0.0, x, 0.01 * x)            # torch default slope
    # elu(alpha=1); clamp the exp argument so the unselected branch cannot overflow
    return lambda x: jnp.where(x >= 0.0, x, jnp.exp(jnp.minimum(x, 0.0)) - 1.0)


# ------------------------------- Pallas kernels --------------------------------
def _conv_pool_act_kernel(act, p_ref, w_ref, o_ref):
    # p_ref: (4, TM, K) bf16 -- the 4 members of each 2x2 pool window, im2col rows
    # w_ref: (K, C)    bf16 -- conv weight slab, true (unpadded) K and C
    # o_ref: (TM, C)   bf16 -- act(max_pool2d(conv(x), 2)) for this row tile
    w = w_ref[...]
    z0 = jnp.dot(p_ref[0], w, preferred_element_type=jnp.float32)
    z1 = jnp.dot(p_ref[1], w, preferred_element_type=jnp.float32)
    z2 = jnp.dot(p_ref[2], w, preferred_element_type=jnp.float32)
    z3 = jnp.dot(p_ref[3], w, preferred_element_type=jnp.float32)
    z = jnp.maximum(jnp.maximum(z0, z1), jnp.maximum(z2, z3))         # 2x2 max-pool (VPU)
    o_ref[...] = act(z).astype(o_ref.dtype)


def _tail_kernel(act, p_ref, w2_ref, w1_ref, b1_ref, wf2_ref, b2_ref, o_ref):
    # Fused: conv2 + 2x2 max-pool + act -> fc1 + act -> fc2 + log_softmax.
    # p_ref : (4, 16, TB, K2) bf16  stage-2 pool-grouped patches, rows ordered (r, n)
    # w2_ref: (K2, C2)        bf16  conv2 weight slab (K2 = 25*c1, unpadded)
    # w1_ref: (16, C2, FC)    bf16  fc1 weight with the torch (c,h,w) flatten folded in
    # b1_ref: (1, FC) f32; wf2_ref: (FC, 10) bf16; b2_ref: (1, 10) f32
    # o_ref : (TB, 10) f32    log_softmax over the 10 real classes
    _, r16, tb, k2 = p_ref.shape
    w2 = w2_ref[...]

    def member(a):
        return jnp.dot(p_ref[a].reshape(r16 * tb, k2), w2,
                       preferred_element_type=jnp.float32)

    z = jnp.maximum(jnp.maximum(member(0), member(1)),
                    jnp.maximum(member(2), member(3)))                # (16*TB, C2)
    # TODO(synk): conv2_drop (nn.Dropout2d) implemented as identity (eval mode).
    y2 = act(z).astype(jnp.bfloat16)

    # fc1: sum over the 16 pooled spatial positions; rows are (r, n)-ordered so each
    # position is a contiguous, 8-aligned row block; w1 is indexed on a leading dim.
    h = jnp.dot(y2[0:tb, :], w1_ref[0], preferred_element_type=jnp.float32)
    for r in range(1, r16):
        h = h + jnp.dot(y2[r * tb:(r + 1) * tb, :], w1_ref[r],
                        preferred_element_type=jnp.float32)
    h = act(h + b1_ref[...])
    # TODO(synk): F.dropout implemented as identity (training=False / eval mode).

    logits = jnp.dot(h.astype(jnp.bfloat16), wf2_ref[...],
                     preferred_element_type=jnp.float32) + b2_ref[...]
    m = jnp.max(logits, axis=-1, keepdims=True)
    s = logits - m
    lse = jnp.log(jnp.sum(jnp.exp(s), axis=-1, keepdims=True))
    o_ref[...] = (s - lse).astype(o_ref.dtype)


# ------------------------------ pallas_call wrappers ----------------------------
def conv_pool_act(patches, w, act, act_name, target_tm=1024):
    """act(max over the 4 pool members of (patches @ w)), tiled over the row axis."""
    _, m, k = patches.shape
    c = w.shape[1]
    tm, g = _pick_tiles(m, target_tm)
    mp = tm * g
    if mp != m:
        patches = jnp.pad(patches, ((0, 0), (0, mp - m), (0, 0)))
    flops = 2 * 4 * mp * k * c
    trans = mp * c if act_name == "elu" else 0
    bytes_accessed = 4 * mp * k * 2 + k * c * 2 + mp * c * 2
    out = pl.pallas_call(
        functools.partial(_conv_pool_act_kernel, act),
        out_shape=jax.ShapeDtypeStruct((mp, c), jnp.bfloat16),
        grid=(g,),
        in_specs=[pl.BlockSpec((4, tm, k), lambda i: (0, i, 0)),
                  pl.BlockSpec((k, c), lambda i: (0, 0))],
        out_specs=pl.BlockSpec((tm, c), lambda i: (i, 0)),
        compiler_params=pltpu.CompilerParams(
            dimension_semantics=("parallel",),
            vmem_limit_bytes=_VMEM_LIMIT_BYTES),
        cost_estimate=pl.CostEstimate(flops=flops, transcendentals=trans,
                                      bytes_accessed=bytes_accessed),
    )(patches, w)
    return out[:m]


def tail(p2, w2, w1, b1, wf2, b2, act, act_name, target_tb=256):
    """Fused conv2-stage + fc1 + act + fc2 + log_softmax, tiled over the batch axis."""
    _, r16, n, k2 = p2.shape
    c2 = w2.shape[1]
    fc_n = w1.shape[2]
    ncls = wf2.shape[1]
    tb, g = _pick_tiles(n, target_tb)
    np_ = tb * g
    if np_ != n:
        p2 = jnp.pad(p2, ((0, 0), (0, 0), (0, np_ - n), (0, 0)))
    flops = 2 * np_ * (4 * r16 * k2 * c2 + r16 * c2 * fc_n + fc_n * ncls)
    trans = np_ * ncls + (np_ * (r16 * c2 + fc_n) if act_name == "elu" else 0)
    bytes_accessed = (4 * r16 * np_ * k2 * 2 + k2 * c2 * 2 + r16 * c2 * fc_n * 2
                      + fc_n * 4 + fc_n * ncls * 2 + ncls * 4 + np_ * ncls * 4)
    out = pl.pallas_call(
        functools.partial(_tail_kernel, act),
        out_shape=jax.ShapeDtypeStruct((np_, ncls), jnp.float32),
        grid=(g,),
        in_specs=[pl.BlockSpec((4, r16, tb, k2), lambda i: (0, 0, i, 0)),
                  pl.BlockSpec((k2, c2), lambda i: (0, 0)),
                  pl.BlockSpec((r16, c2, fc_n), lambda i: (0, 0, 0)),
                  pl.BlockSpec((1, fc_n), lambda i: (0, 0)),
                  pl.BlockSpec((fc_n, ncls), lambda i: (0, 0)),
                  pl.BlockSpec((1, ncls), lambda i: (0, 0))],
        out_specs=pl.BlockSpec((tb, ncls), lambda i: (i, 0)),
        compiler_params=pltpu.CompilerParams(
            dimension_semantics=("parallel",),
            vmem_limit_bytes=_VMEM_LIMIT_BYTES),
        cost_estimate=pl.CostEstimate(flops=flops, transcendentals=trans,
                                      bytes_accessed=bytes_accessed),
    )(p2, w2, w1, b1, wf2, b2)
    return out[:n]


# ------------------------------- plain-JAX glue ---------------------------------
def _pool_patches(x, k):
    # x: (N, H, W, C) -> (4, N, Hp, Wp, k*k*C): im2col patches already grouped by the
    # 2x2 max-pool window member (built with strided XLA slices in ONE fused
    # construction -- no separate HBM transpose).  Patch-element order is (u, v, c).
    n, h, w, c = x.shape
    hp, wp = (h - k + 1) // 2, (w - k + 1) // 2
    members = []
    for di in range(2):
        for dj in range(2):
            cols = [x[:, di + u: di + u + 2 * (hp - 1) + 1: 2,
                      dj + v: dj + v + 2 * (wp - 1) + 1: 2, :]
                    for u in range(k) for v in range(k)]
            m = jnp.stack(cols, axis=3)                  # (N, Hp, Wp, k*k, C)
            members.append(m.reshape(n, hp, wp, k * k * c))
    return jnp.stack(members, axis=0)


# ------------------------------- parameters -------------------------------------
def init_params(key, conv1_n, conv2_n, fc_n):
    # Deterministic synthetic init (stand-in for the xavier/kaiming options).  Conv
    # layers are bias=False exactly as in the reference module; Linear layers keep biases.
    k1, k2, k3, k4 = jax.random.split(key, 4)
    n_flat = 4 * 4 * conv2_n
    return {
        "w_conv1": jax.random.normal(k1, (conv1_n, 1, 5, 5), jnp.float32)
        * (2.0 / 25.0) ** 0.5,
        "w_conv2": jax.random.normal(k2, (conv2_n, conv1_n, 5, 5), jnp.float32)
        * (2.0 / (25.0 * conv1_n)) ** 0.5,
        "w_fc1": jax.random.normal(k3, (fc_n, n_flat), jnp.float32)
        * (2.0 / n_flat) ** 0.5,
        "b_fc1": jnp.zeros((fc_n,), jnp.float32),
        "w_fc2": jax.random.normal(k4, (10, fc_n), jnp.float32) * (1.0 / fc_n) ** 0.5,
        "b_fc2": jnp.zeros((10,), jnp.float32),
    }


def pack_params(params):
    """One-time repack: (u,v,cin)-ordered conv slabs, fc1 with the torch NCHW flatten
    order folded in, bf16 matmul operands (biases stay f32).  No 128-padding anywhere."""
    c1 = params["w_conv1"].shape[0]
    c2 = params["w_conv2"].shape[0]
    fc_n, n_flat = params["w_fc1"].shape
    ncls = params["w_fc2"].shape[0]
    w1 = params["w_conv1"].transpose(2, 3, 1, 0).reshape(25, c1)           # (25, c1)
    w2 = params["w_conv2"].transpose(2, 3, 1, 0).reshape(25 * c1, c2)      # (25*c1, c2)
    # torch flattens conv2 output as (c, h, w) = c*16 + r; repack as [r, c, f] so the
    # kernel consumes pooled rows in (r, n) order with no in-kernel transpose.
    wf1 = params["w_fc1"].reshape(fc_n, c2, 16).transpose(2, 1, 0)         # (16, c2, fc_n)
    packed = {
        "w_conv1": w1.astype(jnp.bfloat16),
        "w_conv2": w2.astype(jnp.bfloat16),
        "w_fc1": wf1.astype(jnp.bfloat16),
        "b_fc1": params["b_fc1"].reshape(1, fc_n).astype(jnp.float32),
        "w_fc2": params["w_fc2"].T.astype(jnp.bfloat16),                   # (fc_n, 10)
        "b_fc2": params["b_fc2"].reshape(1, ncls).astype(jnp.float32),
    }
    meta = {"conv1_n": c1, "conv2_n": c2, "n_flat": n_flat, "n_classes": ncls}
    return packed, meta


# ------------------------------- forward pass ------------------------------------
def net_forward(x, packed, meta, act_name="relu"):
    act = _make_act(act_name)
    n = x.shape[0]
    c1 = meta["conv1_n"]

    x_nhwc = x.transpose(0, 2, 3, 1)                                   # NCHW -> NHWC once

    # stage 1: act(max_pool2d(conv1(x), 2)) -- true K=25, pool-grouped patches
    p1 = _pool_patches(x_nhwc, 5).reshape(4, n * 144, 25).astype(jnp.bfloat16)
    y1 = conv_pool_act(p1, packed["w_conv1"], act, act_name)           # (N*144, c1) bf16
    y1 = y1.reshape(n, 12, 12, c1)

    # stage 2 + head fused in ONE kernel: conv2 + pool + act, fc1 + act, fc2, log_softmax
    p2 = _pool_patches(y1, 5).reshape(4, n, 16, 25 * c1)               # (4, N, 16, K2)
    p2 = p2.transpose(0, 2, 1, 3)                                      # (4, 16, N, K2): rows (r, n)
    return tail(p2, packed["w_conv2"], packed["w_fc1"], packed["b_fc1"],
                packed["w_fc2"], packed["b_fc2"], act, act_name)


if __name__ == "__main__":
    key = jax.random.PRNGKey(0)
    kx, kp = jax.random.split(key)

    N, conv1_n, conv2_n, fc_n = 2, 4, 8, 32
    x = jax.random.normal(kx, (N, 1, 28, 28), jnp.float32)
    params = init_params(kp, conv1_n, conv2_n, fc_n)
    packed, meta = pack_params(params)

    fwd = jax.jit(functools.partial(net_forward, meta=meta, act_name="relu"))
    out = jax.block_until_ready(fwd(x, packed))

    assert out.shape == (N, 10)
    assert bool(jnp.all(jnp.isfinite(out)))
    # rows of exp(log_softmax) must sum to 1
    assert bool(jnp.allclose(jnp.sum(jnp.exp(out), axis=-1), 1.0, atol=1e-3))
    print("KERNEL_OK")
</pallas_src>

<mosaic_0001>
module attributes {stable_mosaic.version = 11 : i64} {
  func.func @_conv_pool_act_kernel(%arg0: i32, %arg1: memref<4x144x25xbf16, #tpu.memory_space<vmem>>, %arg2: memref<25x4xbf16, #tpu.memory_space<vmem>>, %arg3: memref<144x4xbf16, #tpu.memory_space<vmem>>) attributes {dimension_semantics = [#tpu.dimension_semantics<parallel>], iteration_bounds = array<i64: 2>, scalar_prefetch = 0 : i64, scratch_operands = 0 : i64, tpu.core_type = #tpu.core_type<tc>, window_params = [{transform_indices = @transform_0, window_bounds = array<i64: 4, 144, 25>}, {pipeline_mode = #tpu.pipeline_mode<synchronous>, transform_indices = @transform_1, window_bounds = array<i64: 25, 4>}, {transform_indices = @transform_2, window_bounds = array<i64: 144, 4>}]} {
    %c0 = arith.constant 0 : index
    %c0_0 = arith.constant 0 : index
    %0 = vector.load %arg2[%c0, %c0_0] : memref<25x4xbf16, #tpu.memory_space<vmem>>, vector<25x4xbf16>
    %c0_1 = arith.constant 0 : index
    %c0_2 = arith.constant 0 : index
    %c0_3 = arith.constant 0 : index
    %1 = vector.load %arg1[%c0_1, %c0_2, %c0_3] : memref<4x144x25xbf16, #tpu.memory_space<vmem>>, vector<1x144x25xbf16>
    %2 = vector.shape_cast %1 : vector<1x144x25xbf16> to vector<144x25xbf16>
    %cst = arith.constant dense<0.000000e+00> : vector<144x4xf32>
    %3 = tpu.matmul %2, %0, %cst {dimension_numbers = #tpu.dot_dimension_numbers<[1], [0], [0], [1], [0, 0, 1, 1], [], []>} : vector<144x25xbf16>, vector<25x4xbf16>, vector<144x4xf32> -> vector<144x4xf32>
    %c1 = arith.constant 1 : index
    %c0_4 = arith.constant 0 : index
    %c0_5 = arith.constant 0 : index
    %4 = vector.load %arg1[%c1, %c0_4, %c0_5] : memref<4x144x25xbf16, #tpu.memory_space<vmem>>, vector<1x144x25xbf16>
    %5 = vector.shape_cast %4 : vector<1x144x25xbf16> to vector<144x25xbf16>
    %cst_6 = arith.constant dense<0.000000e+00> : vector<144x4xf32>
    %6 = tpu.matmul %5, %0, %cst_6 {dimension_numbers = #tpu.dot_dimension_numbers<[1], [0], [0], [1], [0, 0, 1, 1], [], []>} : vector<144x25xbf16>, vector<25x4xbf16>, vector<144x4xf32> -> vector<144x4xf32>
    %c2 = arith.constant 2 : index
    %c0_7 = arith.constant 0 : index
    %c0_8 = arith.constant 0 : index
    %7 = vector.load %arg1[%c2, %c0_7, %c0_8] : memref<4x144x25xbf16, #tpu.memory_space<vmem>>, vector<1x144x25xbf16>
    %8 = vector.shape_cast %7 : vector<1x144x25xbf16> to vector<144x25xbf16>
    %cst_9 = arith.constant dense<0.000000e+00> : vector<144x4xf32>
    %9 = tpu.matmul %8, %0, %cst_9 {dimension_numbers = #tpu.dot_dimension_numbers<[1], [0], [0], [1], [0, 0, 1, 1], [], []>} : vector<144x25xbf16>, vector<25x4xbf16>, vector<144x4xf32> -> vector<144x4xf32>
    %c3 = arith.constant 3 : index
    %c0_10 = arith.constant 0 : index
    %c0_11 = arith.constant 0 : index
    %10 = vector.load %arg1[%c3, %c0_10, %c0_11] : memref<4x144x25xbf16, #tpu.memory_space<vmem>>, vector<1x144x25xbf16>
    %11 = vector.shape_cast %10 : vector<1x144x25xbf16> to vector<144x25xbf16>
    %cst_12 = arith.constant dense<0.000000e+00> : vector<144x4xf32>
    %12 = tpu.matmul %11, %0, %cst_12 {dimension_numbers = #tpu.dot_dimension_numbers<[1], [0], [0], [1], [0, 0, 1, 1], [], []>} : vector<144x25xbf16>, vector<25x4xbf16>, vector<144x4xf32> -> vector<144x4xf32>
    %13 = arith.maximumf %3, %6 : vector<144x4xf32>
    %14 = arith.maximumf %9, %12 : vector<144x4xf32>
    %15 = arith.maximumf %13, %14 : vector<144x4xf32>
    %cst_13 = arith.constant 0.000000e+00 : f32
    %16 = vector.broadcast %cst_13 : f32 to vector<144x4xf32>
    %17 = arith.maximumf %15, %16 : vector<144x4xf32>
    %18 = arith.truncf %17 : vector<144x4xf32> to vector<144x4xbf16>
    %c0_14 = arith.constant 0 : index
    %c0_15 = arith.constant 0 : index
    %19 = vector.load %arg3[%c0_14, %c0_15] : memref<144x4xbf16, #tpu.memory_space<vmem>>, vector<144x4xbf16>
    tpu.vector_store %arg3[%c0_14, %c0_15], %18 {strides = array<i32>} : memref<144x4xbf16, #tpu.memory_space<vmem>>, vector<144x4xbf16>,
    return
  }
  func.func @transform_0(%arg0: i32) -> (i32, i32, i32) {
    %c0_i32 = arith.constant 0 : i32
    %c0_i32_0 = arith.constant 0 : i32
    %c0_i32_1 = arith.constant 0 : i32
    return %c0_i32, %arg0, %c0_i32_0 : i32, i32, i32
  }
  func.func @transform_1(%arg0: i32) -> (i32, i32) {
    %c0_i32 = arith.constant 0 : i32
    %c0_i32_0 = arith.constant 0 : i32
    %c0_i32_1 = arith.constant 0 : i32
    return %c0_i32, %c0_i32_0 : i32, i32
  }
  func.func @transform_2(%arg0: i32) -> (i32, i32) {
    %c0_i32 = arith.constant 0 : i32
    %c0_i32_0 = arith.constant 0 : i32
    return %arg0, %c0_i32 : i32, i32
  }
}

module attributes {stable_mosaic.version = 11 : i64} {
  func.func @_tail_kernel(%arg0: i32, %arg1: memref<4x16x8x100xbf16, #tpu.memory_space<vmem>>, %arg2: memref<100x8xbf16, #tpu.memory_space<vmem>>, %arg3: memref<16x8x32xbf16, #tpu.memory_space<vmem>>, %arg4: memref<1x32xf32, #tpu.memory_space<vmem>>, %arg5: memref<32x10xbf16, #tpu.memory_space<vmem>>, %arg6: memref<1x10xf32, #tpu.memory_space<vmem>>, %arg7: memref<8x10xf32, #tpu.memory_space<vmem>>) attributes {dimension_semantics = [#tpu.dimension_semantics<parallel>], iteration_bounds = array<i64: 1>, scalar_prefetch = 0 : i64, scratch_operands = 0 : i64, tpu.core_type = #tpu.core_type<tc>, window_params = [{transform_indices = @transform_0, window_bounds = array<i64: 4, 16, 8, 100>}, {pipeline_mode = #tpu.pipeline_mode<synchronous>, transform_indices = @transform_1, window_bounds = array<i64: 100, 8>}, {pipeline_mode = #tpu.pipeline_mode<synchronous>, transform_indices = @transform_2, window_bounds = array<i64: 16, 8, 32>}, {pipeline_mode = #tpu.pipeline_mode<synchronous>, transform_indices = @transform_3, window_bounds = array<i64: 1, 32>}, {pipeline_mode = #tpu.pipeline_mode<synchronous>, transform_indices = @transform_4, window_bounds = array<i64: 32, 10>}, {pipeline_mode = #tpu.pipeline_mode<synchronous>, transform_indices = @transform_5, window_bounds = array<i64: 1, 10>}, {transform_indices = @transform_6, window_bounds = array<i64: 8, 10>}]} {
    %c0 = arith.constant 0 : index
    %c0_0 = arith.constant 0 : index
    %0 = vector.load %arg2[%c0, %c0_0] : memref<100x8xbf16, #tpu.memory_space<vmem>>, vector<100x8xbf16>
    %c0_1 = arith.constant 0 : index
    %c0_2 = arith.constant 0 : index
    %c0_3 = arith.constant 0 : index
    %c0_4 = arith.constant 0 : index
    %1 = vector.load %arg1[%c0_1, %c0_2, %c0_3, %c0_4] : memref<4x16x8x100xbf16, #tpu.memory_space<vmem>>, vector<1x16x8x100xbf16>
    %2 = vector.shape_cast %1 : vector<1x16x8x100xbf16> to vector<16x8x100xbf16>
    %3 = vector.shape_cast %2 : vector<16x8x100xbf16> to vector<128x100xbf16>
    %cst = arith.constant dense<0.000000e+00> : vector<128x8xf32>
    %4 = tpu.matmul %3, %0, %cst {dimension_numbers = #tpu.dot_dimension_numbers<[1], [0], [0], [1], [0, 0, 1, 1], [], []>} : vector<128x100xbf16>, vector<100x8xbf16>, vector<128x8xf32> -> vector<128x8xf32>
    %c1 = arith.constant 1 : index
    %c0_5 = arith.constant 0 : index
    %c0_6 = arith.constant 0 : index
    %c0_7 = arith.constant 0 : index
    %5 = vector.load %arg1[%c1, %c0_5, %c0_6, %c0_7] : memref<4x16x8x100xbf16, #tpu.memory_space<vmem>>, vector<1x16x8x100xbf16>
    %6 = vector.shape_cast %5 : vector<1x16x8x100xbf16> to vector<16x8x100xbf16>
    %7 = vector.shape_cast %6 : vector<16x8x100xbf16> to vector<128x100xbf16>
    %cst_8 = arith.constant dense<0.000000e+00> : vector<128x8xf32>
    %8 = tpu.matmul %7, %0, %cst_8 {dimension_numbers = #tpu.dot_dimension_numbers<[1], [0], [0], [1], [0, 0, 1, 1], [], []>} : vector<128x100xbf16>, vector<100x8xbf16>, vector<128x8xf32> -> vector<128x8xf32>
    %9 = arith.maximumf %4, %8 : vector<128x8xf32>
    %c2 = arith.constant 2 : index
    %c0_9 = arith.constant 0 : index
    %c0_10 = arith.constant 0 : index
    %c0_11 = arith.constant 0 : index
    %10 = vector.load %arg1[%c2, %c0_9, %c0_10, %c0_11] : memref<4x16x8x100xbf16, #tpu.memory_space<vmem>>, vector<1x16x8x100xbf16>
    %11 = vector.shape_cast %10 : vector<1x16x8x100xbf16> to vector<16x8x100xbf16>
    %12 = vector.shape_cast %11 : vector<16x8x100xbf16> to vector<128x100xbf16>
    %cst_12 = arith.constant dense<0.000000e+00> : vector<128x8xf32>
    %13 = tpu.matmul %12, %0, %cst_12 {dimension_numbers = #tpu.dot_dimension_numbers<[1], [0], [0], [1], [0, 0, 1, 1], [], []>} : vector<128x100xbf16>, vector<100x8xbf16>, vector<128x8xf32> -> vector<128x8xf32>
    %c3 = arith.constant 3 : index
    %c0_13 = arith.constant 0 : index
    %c0_14 = arith.constant 0 : index
    %c0_15 = arith.constant 0 : index
    %14 = vector.load %arg1[%c3, %c0_13, %c0_14, %c0_15] : memref<4x16x8x100xbf16, #tpu.memory_space<vmem>>, vector<1x16x8x100xbf16>
    %15 = vector.shape_cast %14 : vector<1x16x8x100xbf16> to vector<16x8x100xbf16>
    %16 = vector.shape_cast %15 : vector<16x8x100xbf16> to vector<128x100xbf16>
    %cst_16 = arith.constant dense<0.000000e+00> : vector<128x8xf32>
    %17 = tpu.matmul %16, %0, %cst_16 {dimension_numbers = #tpu.dot_dimension_numbers<[1], [0], [0], [1], [0, 0, 1, 1], [], []>} : vector<128x100xbf16>, vector<100x8xbf16>, vector<128x8xf32> -> vector<128x8xf32>
    %18 = arith.maximumf %13, %17 : vector<128x8xf32>
    %19 = arith.maximumf %9, %18 : vector<128x8xf32>
    %cst_17 = arith.constant 0.000000e+00 : f32
    %20 = vector.broadcast %cst_17 : f32 to vector<128x8xf32>
    %21 = arith.maximumf %19, %20 : vector<128x8xf32>
    %22 = arith.truncf %21 : vector<128x8xf32> to vector<128x8xbf16>
    %23 = vector.extract_strided_slice %22 {offsets = [0, 0], sizes = [8, 8], strides = [1, 1]} : vector<128x8xbf16> to vector<8x8xbf16>
    %c0_18 = arith.constant 0 : index
    %c0_19 = arith.constant 0 : index
    %c0_20 = arith.constant 0 : index
    %24 = vector.load %arg3[%c0_18, %c0_19, %c0_20] : memref<16x8x32xbf16, #tpu.memory_space<vmem>>, vector<1x8x32xbf16>
    %25 = vector.shape_cast %24 : vector<1x8x32xbf16> to vector<8x32xbf16>
    %cst_21 = arith.constant dense<0.000000e+00> : vector<8x32xf32>
    %26 = tpu.matmul %23, %25, %cst_21 {dimension_numbers = #tpu.dot_dimension_numbers<[1], [0], [0], [1], [0, 0, 1, 1], [], []>} : vector<8x8xbf16>, vector<8x32xbf16>, vector<8x32xf32> -> vector<8x32xf32>
    %27 = vector.extract_strided_slice %22 {offsets = [8, 0], sizes = [8, 8], strides = [1, 1]} : vector<128x8xbf16> to vector<8x8xbf16>
    %c1_22 = arith.constant 1 : index
    %c0_23 = arith.constant 0 : index
    %c0_24 = arith.constant 0 : index
    %28 = vector.load %arg3[%c1_22, %c0_23, %c0_24] : memref<16x8x32xbf16, #tpu.memory_space<vmem>>, vector<1x8x32xbf16>
    %29 = vector.shape_cast %28 : vector<1x8x32xbf16> to vector<8x32xbf16>
    %cst_25 = arith.constant dense<0.000000e+00> : vector<8x32xf32>
    %30 = tpu.matmul %27, %29, %cst_25 {dimension_numbers = #tpu.dot_dimension_numbers<[1], [0], [0], [1], [0, 0, 1, 1], [], []>} : vector<8x8xbf16>, vector<8x32xbf16>, vector<8x32xf32> -> vector<8x32xf32>
    %31 = arith.addf %26, %30 : vector<8x32xf32>
    %32 = vector.extract_strided_slice %22 {offsets = [16, 0], sizes = [8, 8], strides = [1, 1]} : vector<128x8xbf16> to vector<8x8xbf16>
    %c2_26 = arith.constant 2 : index
    %c0_27 = arith.constant 0 : index
    %c0_28 = arith.constant 0 : index
    %33 = vector.load %arg3[%c2_26, %c0_27, %c0_28] : memref<16x8x32xbf16, #tpu.memory_space<vmem>>, vector<1x8x32xbf16>
    %34 = vector.shape_cast %33 : vector<1x8x32xbf16> to vector<8x32xbf16>
    %cst_29 = arith.constant dense<0.000000e+00> : vector<8x32xf32>
    %35 = tpu.matmul %32, %34, %cst_29 {dimension_numbers = #tpu.dot_dimension_numbers<[1], [0], [0], [1], [0, 0, 1, 1], [], []>} : vector<8x8xbf16>, vector<8x32xbf16>, vector<8x32xf32> -> vector<8x32xf32>
    %36 = arith.addf %31, %35 : vector<8x32xf32>
    %37 = vector.extract_strided_slice %22 {offsets = [24, 0], sizes = [8, 8], strides = [1, 1]} : vector<128x8xbf16> to vector<8x8xbf16>
    %c3_30 = arith.constant 3 : index
    %c0_31 = arith.constant 0 : index
    %c0_32 = arith.constant 0 : index
    %38 = vector.load %arg3[%c3_30, %c0_31, %c0_32] : memref<16x8x32xbf16, #tpu.memory_space<vmem>>, vector<1x8x32xbf16>
    %39 = vector.shape_cast %38 : vector<1x8x32xbf16> to vector<8x32xbf16>
    %cst_33 = arith.constant dense<0.000000e+00> : vector<8x32xf32>
    %40 = tpu.matmul %37, %39, %cst_33 {dimension_numbers = #tpu.dot_dimension_numbers<[1], [0], [0], [1], [0, 0, 1, 1], [], []>} : vector<8x8xbf16>, vector<8x32xbf16>, vector<8x32xf32> -> vector<8x32xf32>
    %41 = arith.addf %36, %40 : vector<8x32xf32>
    %42 = vector.extract_strided_slice %22 {offsets = [32, 0], sizes = [8, 8], strides = [1, 1]} : vector<128x8xbf16> to vector<8x8xbf16>
    %c4 = arith.constant 4 : index
    %c0_34 = arith.constant 0 : index
    %c0_35 = arith.constant 0 : index
    %43 = vector.load %arg3[%c4, %c0_34, %c0_35] : memref<16x8x32xbf16, #tpu.memory_space<vmem>>, vector<1x8x32xbf16>
    %44 = vector.shape_cast %43 : vector<1x8x32xbf16> to vector<8x32xbf16>
    %cst_36 = arith.constant dense<0.000000e+00> : vector<8x32xf32>
    %45 = tpu.matmul %42, %44, %cst_36 {dimension_numbers = #tpu.dot_dimension_numbers<[1], [0], [0], [1], [0, 0, 1, 1], [], []>} : vector<8x8xbf16>, vector<8x32xbf16>, vector<8x32xf32> -> vector<8x32xf32>
    %46 = arith.addf %41, %45 : vector<8x32xf32>
    %47 = vector.extract_strided_slice %22 {offsets = [40, 0], sizes = [8, 8], strides = [1, 1]} : vector<128x8xbf16> to vector<8x8xbf16>
    %c5 = arith.constant 5 : index
    %c0_37 = arith.constant 0 : index
    %c0_38 = arith.constant 0 : index
    %48 = vector.load %arg3[%c5, %c0_37, %c0_38] : memref<16x8x32xbf16, #tpu.memory_space<vmem>>, vector<1x8x32xbf16>
    %49 = vector.shape_cast %48 : vector<1x8x32xbf16> to vector<8x32xbf16>
    %cst_39 = arith.constant dense<0.000000e+00> : vector<8x32xf32>
    %50 = tpu.matmul %47, %49, %cst_39 {dimension_numbers = #tpu.dot_dimension_numbers<[1], [0], [0], [1], [0, 0, 1, 1], [], []>} : vector<8x8xbf16>, vector<8x32xbf16>, vector<8x32xf32> -> vector<8x32xf32>
    %51 = arith.addf %46, %50 : vector<8x32xf32>
    %52 = vector.extract_strided_slice %22 {offsets = [48, 0], sizes = [8, 8], strides = [1, 1]} : vector<128x8xbf16> to vector<8x8xbf16>
    %c6 = arith.constant 6 : index
    %c0_40 = arith.constant 0 : index
    %c0_41 = arith.constant 0 : index
    %53 = vector.load %arg3[%c6, %c0_40, %c0_41] : memref<16x8x32xbf16, #tpu.memory_space<vmem>>, vector<1x8x32xbf16>
    %54 = vector.shape_cast %53 : vector<1x8x32xbf16> to vector<8x32xbf16>
    %cst_42 = arith.constant dense<0.000000e+00> : vector<8x32xf32>
    %55 = tpu.matmul %52, %54, %cst_42 {dimension_numbers = #tpu.dot_dimension_numbers<[1], [0], [0], [1], [0, 0, 1, 1], [], []>} : vector<8x8xbf16>, vector<8x32xbf16>, vector<8x32xf32> -> vector<8x32xf32>
    %56 = arith.addf %51, %55 : vector<8x32xf32>
    %57 = vector.extract_strided_slice %22 {offsets = [56, 0], sizes = [8, 8], strides = [1, 1]} : vector<128x8xbf16> to vector<8x8xbf16>
    %c7 = arith.constant 7 : index
    %c0_43 = arith.constant 0 : index
    %c0_44 = arith.constant 0 : index
    %58 = vector.load %arg3[%c7, %c0_43, %c0_44] : memref<16x8x32xbf16, #tpu.memory_space<vmem>>, vector<1x8x32xbf16>
    %59 = vector.shape_cast %58 : vector<1x8x32xbf16> to vector<8x32xbf16>
    %cst_45 = arith.constant dense<0.000000e+00> : vector<8x32xf32>
    %60 = tpu.matmul %57, %59, %cst_45 {dimension_numbers = #tpu.dot_dimension_numbers<[1], [0], [0], [1], [0, 0, 1, 1], [], []>} : vector<8x8xbf16>, vector<8x32xbf16>, vector<8x32xf32> -> vector<8x32xf32>
    %61 = arith.addf %56, %60 : vector<8x32xf32>
    %62 = vector.extract_strided_slice %22 {offsets = [64, 0], sizes = [8, 8], strides = [1, 1]} : vector<128x8xbf16> to vector<8x8xbf16>
    %c8 = arith.constant 8 : index
    %c0_46 = arith.constant 0 : index
    %c0_47 = arith.constant 0 : index
    %63 = vector.load %arg3[%c8, %c0_46, %c0_47] : memref<16x8x32xbf16, #tpu.memory_space<vmem>>, vector<1x8x32xbf16>
    %64 = vector.shape_cast %63 : vector<1x8x32xbf16> to vector<8x32xbf16>
    %cst_48 = arith.constant dense<0.000000e+00> : vector<8x32xf32>
    %65 = tpu.matmul %62, %64, %cst_48 {dimension_numbers = #tpu.dot_dimension_numbers<[1], [0], [0], [1], [0, 0, 1, 1], [], []>} : vector<8x8xbf16>, vector<8x32xbf16>, vector<8x32xf32> -> vector<8x32xf32>
    %66 = arith.addf %61, %65 : vector<8x32xf32>
    %67 = vector.extract_strided_slice %22 {offsets = [72, 0], sizes = [8, 8], strides = [1, 1]} : vector<128x8xbf16> to vector<8x8xbf16>
    %c9 = arith.constant 9 : index
    %c0_49 = arith.constant 0 : index
    %c0_50 = arith.constant 0 : index
    %68 = vector.load %arg3[%c9, %c0_49, %c0_50] : memref<16x8x32xbf16, #tpu.memory_space<vmem>>, vector<1x8x32xbf16>
    %69 = vector.shape_cast %68 : vector<1x8x32xbf16> to vector<8x32xbf16>
    %cst_51 = arith.constant dense<0.000000e+00> : vector<8x32xf32>
    %70 = tpu.matmul %67, %69, %cst_51 {dimension_numbers = #tpu.dot_dimension_numbers<[1], [0], [0], [1], [0, 0, 1, 1], [], []>} : vector<8x8xbf16>, vector<8x32xbf16>, vector<8x32xf32> -> vector<8x32xf32>
    %71 = arith.addf %66, %70 : vector<8x32xf32>
    %72 = vector.extract_strided_slice %22 {offsets = [80, 0], sizes = [8, 8], strides = [1, 1]} : vector<128x8xbf16> to vector<8x8xbf16>
    %c10 = arith.constant 10 : index
    %c0_52 = arith.constant 0 : index
    %c0_53 = arith.constant 0 : index
    %73 = vector.load %arg3[%c10, %c0_52, %c0_53] : memref<16x8x32xbf16, #tpu.memory_space<vmem>>, vector<1x8x32xbf16>
    %74 = vector.shape_cast %73 : vector<1x8x32xbf16> to vector<8x32xbf16>
    %cst_54 = arith.constant dense<0.000000e+00> : vector<8x32xf32>
    %75 = tpu.matmul %72, %74, %cst_54 {dimension_numbers = #tpu.dot_dimension_numbers<[1], [0], [0], [1], [0, 0, 1, 1], [], []>} : vector<8x8xbf16>, vector<8x32xbf16>, vector<8x32xf32> -> vector<8x32xf32>
    %76 = arith.addf %71, %75 : vector<8x32xf32>
    %77 = vector.extract_strided_slice %22 {offsets = [88, 0], sizes = [8, 8], strides = [1, 1]} : vector<128x8xbf16> to vector<8x8xbf16>
    %c11 = arith.constant 11 : index
    %c0_55 = arith.constant 0 : index
    %c0_56 = arith.constant 0 : index
    %78 = vector.load %arg3[%c11, %c0_55, %c0_56] : memref<16x8x32xbf16, #tpu.memory_space<vmem>>, vector<1x8x32xbf16>
    %79 = vector.shape_cast %78 : vector<1x8x32xbf16> to vector<8x32xbf16>
    %cst_57 = arith.constant dense<0.000000e+00> : vector<8x32xf32>
    %80 = tpu.matmul %77, %79, %cst_57 {dimension_numbers = #tpu.dot_dimension_numbers<[1], [0], [0], [1], [0, 0, 1, 1], [], []>} : vector<8x8xbf16>, vector<8x32xbf16>, vector<8x32xf32> -> vector<8x32xf32>
    %81 = arith.addf %76, %80 : vector<8x32xf32>
    %82 = vector.extract_strided_slice %22 {offsets = [96, 0], sizes = [8, 8], strides = [1, 1]} : vector<128x8xbf16> to vector<8x8xbf16>
    %c12 = arith.constant 12 : index
    %c0_58 = arith.constant 0 : index
    %c0_59 = arith.constant 0 : index
    %83 = vector.load %arg3[%c12, %c0_58, %c0_59] : memref<16x8x32xbf16, #tpu.memory_space<vmem>>, vector<1x8x32xbf16>
    %84 = vector.shape_cast %83 : vector<1x8x32xbf16> to vector<8x32xbf16>
    %cst_60 = arith.constant dense<0.000000e+00> : vector<8x32xf32>
    %85 = tpu.matmul %82, %84, %cst_60 {dimension_numbers = #tpu.dot_dimension_numbers<[1], [0], [0], [1], [0, 0, 1, 1], [], []>} : vector<8x8xbf16>, vector<8x32xbf16>, vector<8x32xf32> -> vector<8x32xf32>
    %86 = arith.addf %81, %85 : vector<8x32xf32>
    %87 = vector.extract_strided_slice %22 {offsets = [104, 0], sizes = [8, 8], strides = [1, 1]} : vector<128x8xbf16> to vector<8x8xbf16>
    %c13 = arith.constant 13 : index
    %c0_61 = arith.constant 0 : index
    %c0_62 = arith.constant 0 : index
    %88 = vector.load %arg3[%c13, %c0_61, %c0_62] : memref<16x8x32xbf16, #tpu.memory_space<vmem>>, vector<1x8x32xbf16>
    %89 = vector.shape_cast %88 : vector<1x8x32xbf16> to vector<8x32xbf16>
    %cst_63 = arith.constant dense<0.000000e+00> : vector<8x32xf32>
    %90 = tpu.matmul %87, %89, %cst_63 {dimension_numbers = #tpu.dot_dimension_numbers<[1], [0], [0], [1], [0, 0, 1, 1], [], []>} : vector<8x8xbf16>, vector<8x32xbf16>, vector<8x32xf32> -> vector<8x32xf32>
    %91 = arith.addf %86, %90 : vector<8x32xf32>
    %92 = vector.extract_strided_slice %22 {offsets = [112, 0], sizes = [8, 8], strides = [1, 1]} : vector<128x8xbf16> to vector<8x8xbf16>
    %c14 = arith.constant 14 : index
    %c0_64 = arith.constant 0 : index
    %c0_65 = arith.constant 0 : index
    %93 = vector.load %arg3[%c14, %c0_64, %c0_65] : memref<16x8x32xbf16, #tpu.memory_space<vmem>>, vector<1x8x32xbf16>
    %94 = vector.shape_cast %93 : vector<1x8x32xbf16> to vector<8x32xbf16>
    %cst_66 = arith.constant dense<0.000000e+00> : vector<8x32xf32>
    %95 = tpu.matmul %92, %94, %cst_66 {dimension_numbers = #tpu.dot_dimension_numbers<[1], [0], [0], [1], [0, 0, 1, 1], [], []>} : vector<8x8xbf16>, vector<8x32xbf16>, vector<8x32xf32> -> vector<8x32xf32>
    %96 = arith.addf %91, %95 : vector<8x32xf32>
    %97 = vector.extract_strided_slice %22 {offsets = [120, 0], sizes = [8, 8], strides = [1, 1]} : vector<128x8xbf16> to vector<8x8xbf16>
    %c15 = arith.constant 15 : index
    %c0_67 = arith.constant 0 : index
    %c0_68 = arith.constant 0 : index
    %98 = vector.load %arg3[%c15, %c0_67, %c0_68] : memref<16x8x32xbf16, #tpu.memory_space<vmem>>, vector<1x8x32xbf16>
    %99 = vector.shape_cast %98 : vector<1x8x32xbf16> to vector<8x32xbf16>
    %cst_69 = arith.constant dense<0.000000e+00> : vector<8x32xf32>
    %100 = tpu.matmul %97, %99, %cst_69 {dimension_numbers = #tpu.dot_dimension_numbers<[1], [0], [0], [1], [0, 0, 1, 1], [], []>} : vector<8x8xbf16>, vector<8x32xbf16>, vector<8x32xf32> -> vector<8x32xf32>
    %101 = arith.addf %96, %100 : vector<8x32xf32>
    %c0_70 = arith.constant 0 : index
    %c0_71 = arith.constant 0 : index
    %102 = vector.load %arg4[%c0_70, %c0_71] : memref<1x32xf32, #tpu.memory_space<vmem>>, vector<1x32xf32>
    %103 = vector.broadcast %102 : vector<1x32xf32> to vector<8x32xf32>
    %104 = arith.addf %101, %103 : vector<8x32xf32>
    %cst_72 = arith.constant 0.000000e+00 : f32
    %105 = vector.broadcast %cst_72 : f32 to vector<8x32xf32>
    %106 = arith.maximumf %104, %105 : vector<8x32xf32>
    %107 = arith.truncf %106 : vector<8x32xf32> to vector<8x32xbf16>
    %c0_73 = arith.constant 0 : index
    %c0_74 = arith.constant 0 : index
    %108 = vector.load %arg5[%c0_73, %c0_74] : memref<32x10xbf16, #tpu.memory_space<vmem>>, vector<32x10xbf16>
    %cst_75 = arith.constant dense<0.000000e+00> : vector<8x10xf32>
    %109 = tpu.matmul %107, %108, %cst_75 {dimension_numbers = #tpu.dot_dimension_numbers<[1], [0], [0], [1], [0, 0, 1, 1], [], []>} : vector<8x32xbf16>, vector<32x10xbf16>, vector<8x10xf32> -> vector<8x10xf32>
    %c0_76 = arith.constant 0 : index
    %c0_77 = arith.constant 0 : index
    %110 = vector.load %arg6[%c0_76, %c0_77] : memref<1x10xf32, #tpu.memory_space<vmem>>, vector<1x10xf32>
    %111 = vector.broadcast %110 : vector<1x10xf32> to vector<8x10xf32>
    %112 = arith.addf %109, %111 : vector<8x10xf32>
    %cst_78 = arith.constant dense<0xFF800000> : vector<8xf32>
    %113 = vector.multi_reduction <maximumf>, %112, %cst_78 [1] : vector<8x10xf32> to vector<8xf32>
    %114 = vector.shape_cast %113 : vector<8xf32> to vector<8x1xf32>
    %115 = vector.broadcast %114 : vector<8x1xf32> to vector<8x10xf32>
    %116 = arith.subf %112, %115 : vector<8x10xf32>
    %117 = math.exp %116 : vector<8x10xf32>
    %cst_79 = arith.constant dense<0.000000e+00> : vector<8xf32>
    %118 = vector.multi_reduction <add>, %117, %cst_79 [1] : vector<8x10xf32> to vector<8xf32>
    %119 = vector.shape_cast %118 : vector<8xf32> to vector<8x1xf32>
    %120 = math.log %119 : vector<8x1xf32>
    %121 = vector.broadcast %120 : vector<8x1xf32> to vector<8x10xf32>
    %122 = arith.subf %116, %121 : vector<8x10xf32>
    %c0_80 = arith.constant 0 : index
    %c0_81 = arith.constant 0 : index
    %123 = vector.load %arg7[%c0_80, %c0_81] : memref<8x10xf32, #tpu.memory_space<vmem>>, vector<8x10xf32>
    tpu.vector_store %arg7[%c0_80, %c0_81], %122 {strides = array<i32>} : memref<8x10xf32, #tpu.memory_space<vmem>>, vector<8x10xf32>,
    return
  }
  func.func @transform_0(%arg0: i32) -> (i32, i32, i32, i32) {
    %c0_i32 = arith.constant 0 : i32
    %c0_i32_0 = arith.constant 0 : i32
    %c0_i32_1 = arith.constant 0 : i32
    %c0_i32_2 = arith.constant 0 : i32
    return %c0_i32, %c0_i32_0, %arg0, %c0_i32_1 : i32, i32, i32, i32
  }
  func.func @transform_1(%arg0: i32) -> (i32, i32) {
    %c0_i32 = arith.constant 0 : i32
    %c0_i32_0 = arith.constant 0 : i32
    %c0_i32_1 = arith.constant 0 : i32
    return %c0_i32, %c0_i32_0 : i32, i32
  }
  func.func @transform_2(%arg0: i32) -> (i32, i32, i32) {
    %c0_i32 = arith.constant 0 : i32
    %c0_i32_0 = arith.constant 0 : i32
    %c0_i32_1 = arith.constant 0 : i32
    %c0_i32_2 = arith.constant 0 : i32
    return %c0_i32, %c0_i32_0, %c0_i32_1 : i32, i32, i32
  }
  func.func @transform_3(%arg0: i32) -> (i32, i32) {
    %c0_i32 = arith.constant 0 : i32
    %c0_i32_0 = arith.constant 0 : i32
    %c0_i32_1 = arith.constant 0 : i32
    return %c0_i32, %c0_i32_0 : i32, i32
  }
  func.func @transform_4(%arg0: i32) -> (i32, i32) {
    %c0_i32 = arith.constant 0 : i32
    %c0_i32_0 = arith.constant 0 : i32
    %c0_i32_1 = arith.constant 0 : i32
    return %c0_i32, %c0_i32_0 : i32, i32
  }
  func.func @transform_5(%arg0: i32) -> (i32, i32) {
    %c0_i32 = arith.constant 0 : i32
    %c0_i32_0 = arith.constant 0 : i32
    %c0_i32_1 = arith.constant 0 : i32
    return %c0_i32, %c0_i32_0 : i32, i32
  }
  func.func @transform_6(%arg0: i32) -> (i32, i32) {
    %c0_i32 = arith.constant 0 : i32
    %c0_i32_0 = arith.constant 0 : i32
    return %arg0, %c0_i32 : i32, i32
  }
}

</mosaic_0001>

<bundles_post_ra>
// kernel: net_forward.2
= control target key start
LH: loop header
LB: loop body
LE: loop exit
PB: predicated region body
PF: predicated region fallthrough
CT: control target
= control target key end

     0   :  { %s1991_s9 = smov 0   ;;  %s1993_s10 = smov 0   ;;  %s2479_s0 = inlined_call_operand.vmem [shape: bf16[4,288,25], index: 0, kind: input, shape index: {}]   ;;  %s2480_s1 = inlined_call_operand.vmem [shape: bf16[25,4], index: 1, kind: input, shape index: {}]   ;;  %s2481_s2 = inlined_call_operand.vmem [shape: bf16[288,4], index: 2, kind: output, shape index: {}]  }
   0x1   :  { %s1995_s11 = smov 0  }
   0x2 LB: > { %s1504_s12 = sadd.s32 4294967295, %s1971_s11   ;;  %s2008_s13 = sadd.s32 1, %s1971_s11   ;;  %s1971_s11 = sphi %s1995_s11, %s2488_s11   ;;  %s1967_s10 = sphi %s1993_s10, %s2487_s10   ;;  %s1963_s9 = sphi %s1991_s9, %s2486_s9  }
   0x3   : > { %s16_s14 = ssub.s32 %s1971_s11, %s2008_s13  ;;  %s19_s15 = sadd.s32 1, %s1967_s10 }
   0x4   : > { %p17_p0 = scmp.eq.s32.totalorder %s16_s14, 0  ;;  %p26_p1 = scmp.ne.s32.totalorder %s1967_s10, %s1963_s9 }
   0x5   : > { %p27_p2 = scmp.eq.s32.totalorder %s1971_s11, 0  ;;  %p1507_p4 = scmp.ge.s32.totalorder %s1971_s11, 2 }
   0x6   : > { %s2017_s16 = scalar_select %p17_p0, %s1967_s10, %s19_s15  }
   0x7   : > { %p28_p3 = por %p27_p2, %p26_p1  ;;  %102 = sbr.rel (%p1507_p4) target bundleno = 37 (0x25), region = 20 }
   0xe   : > { %105 = sbr.rel (!%p28_p3) target bundleno = 37 (0x25), region = 24  ;;  %s107_s17 = sand.u32 (%p28_p3), 1, %s1967_s10  }
   0xf   : > { %s1659_s18 = smul.u32 (%p28_p3), 72, %s1971_s11 }
  0x10   : > { %s1882_s19 = smul.u32 (%p28_p3), 288, %s107_s17 }
  0x11   : > { %s2025_s22 = scalar_lea.vmem (%p28_p3), %s2479_s0, %s1659_s18 }
  0x12   : > { %v128_v0 = vld [vmem:[%s2025_s22] sm:$0xff] (%p28_p3)   ;;  %v132_v1 = vld [vmem:[%s2025_s22 + $0x8] sm:$0xff] (%p28_p3)   ;;  %v136_v2 = vld [vmem:[%s2025_s22 + $0x10] sm:$0xff] (%p28_p3)   ;;  %s2030_s23 = scalar_lea.vmem (%p28_p3), [#allocation2], %s1882_s19 }
  0x13   : > { %129 = vst [vmem:[%s2030_s23] sm:$0xff] (%p28_p3), %v128_v0   ;;  %133 = vst [vmem:[%s2030_s23 + $0x8] sm:$0xff] (%p28_p3), %v132_v1   ;;  %v140_v3 = vld [vmem:[%s2025_s22 + $0x18] sm:$0xff] (%p28_p3)   ;;  %v144_v4 = vld [vmem:[%s2025_s22 + $0x20] sm:$0xff] (%p28_p3)  }
  0x14   : > { %137 = vst [vmem:[%s2030_s23 + $0x10] sm:$0xff] (%p28_p3), %v136_v2   ;;  %v148_v5 = vld [vmem:[%s2025_s22 + $0x28] sm:$0xff] (%p28_p3)   ;;  %141 = vst [vmem:[%s2030_s23 + $0x18] sm:$0xff] (%p28_p3), %v140_v3   ;;  %v152_v6 = vld [vmem:[%s2025_s22 + $0x30] sm:$0xff] (%p28_p3)  }
  0x15   : > { %145 = vst [vmem:[%s2030_s23 + $0x20] sm:$0xff] %v144_v4   ;;  %149 = vst [vmem:[%s2030_s23 + $0x28] sm:$0xff] %v148_v5   ;;  %v156_v7 = vld [vmem:[%s2025_s22 + $0x38] sm:$0xff]   ;;  %v160_v8 = vld [vmem:[%s2025_s22 + $0x40] sm:$0xff]  }
  0x16   : > { %153 = vst [vmem:[%s2030_s23 + $0x30] sm:$0xff] %v152_v6   ;;  %157 = vst [vmem:[%s2030_s23 + $0x38] sm:$0xff] %v156_v7   ;;  %v164_v9 = vld [vmem:[%s2025_s22 + $0x90] sm:$0xff]   ;;  %v168_v10 = vld [vmem:[%s2025_s22 + $0x98] sm:$0xff]  }
  0x17   : > { %161 = vst [vmem:[%s2030_s23 + $0x40] sm:$0xff] %v160_v8   ;;  %v172_v11 = vld [vmem:[%s2025_s22 + $0xa0] sm:$0xff]   ;;  %165 = vst [vmem:[%s2030_s23 + $0x48] sm:$0xff] %v164_v9   ;;  %v176_v12 = vld [vmem:[%s2025_s22 + $0xa8] sm:$0xff]  }
  0x18   : > { %169 = vst [vmem:[%s2030_s23 + $0x50] sm:$0xff] %v168_v10   ;;  %173 = vst [vmem:[%s2030_s23 + $0x58] sm:$0xff] %v172_v11   ;;  %v180_v13 = vld [vmem:[%s2025_s22 + $0xb0] sm:$0xff]   ;;  %v184_v14 = vld [vmem:[%s2025_s22 + $0xb8] sm:$0xff]  }
  0x19   : > { %177 = vst [vmem:[%s2030_s23 + $0x60] sm:$0xff] %v176_v12   ;;  %181 = vst [vmem:[%s2030_s23 + $0x68] sm:$0xff] %v180_v13   ;;  %v188_v15 = vld [vmem:[%s2025_s22 + $0xc0] sm:$0xff]   ;;  %v192_v16 = vld [vmem:[%s2025_s22 + $0xc8] sm:$0xff]  }
  0x1a   : > { %185 = vst [vmem:[%s2030_s23 + $0x70] sm:$0xff] %v184_v14   ;;  %v196_v17 = vld [vmem:[%s2025_s22 + $0xd0] sm:$0xff]   ;;  %189 = vst [vmem:[%s2030_s23 + $0x78] sm:$0xff] %v188_v15   ;;  %v200_v18 = vld [vmem:[%s2025_s22 + $0x120] sm:$0xff]  }
  0x1b   : > { %193 = vst [vmem:[%s2030_s23 + $0x80] sm:$0xff] %v192_v16   ;;  %197 = vst [vmem:[%s2030_s23 + $0x88] sm:$0xff] %v196_v17   ;;  %v204_v19 = vld [vmem:[%s2025_s22 + $0x128] sm:$0xff]   ;;  %v208_v20 = vld [vmem:[%s2025_s22 + $0x130] sm:$0xff]  }
  0x1c   : > { %201 = vst [vmem:[%s2030_s23 + $0x90] sm:$0xff] %v200_v18   ;;  %205 = vst [vmem:[%s2030_s23 + $0x98] sm:$0xff] %v204_v19   ;;  %v212_v21 = vld [vmem:[%s2025_s22 + $0x138] sm:$0xff]   ;;  %v216_v22 = vld [vmem:[%s2025_s22 + $0x140] sm:$0xff]  }
  0x1d   : > { %209 = vst [vmem:[%s2030_s23 + $0xa0] sm:$0xff] %v208_v20   ;;  %v220_v23 = vld [vmem:[%s2025_s22 + $0x148] sm:$0xff]   ;;  %213 = vst [vmem:[%s2030_s23 + $0xa8] sm:$0xff] %v212_v21   ;;  %v224_v24 = vld [vmem:[%s2025_s22 + $0x150] sm:$0xff]  }
  0x1e   : > { %217 = vst [vmem:[%s2030_s23 + $0xb0] sm:$0xff] %v216_v22   ;;  %221 = vst [vmem:[%s2030_s23 + $0xb8] sm:$0xff] %v220_v23   ;;  %v228_v25 = vld [vmem:[%s2025_s22 + $0x158] sm:$0xff]   ;;  %v232_v26 = vld [vmem:[%s2025_s22 + $0x160] sm:$0xff]  }
  0x1f   : > { %225 = vst [vmem:[%s2030_s23 + $0xc0] sm:$0xff] %v224_v24   ;;  %229 = vst [vmem:[%s2030_s23 + $0xc8] sm:$0xff] %v228_v25   ;;  %v236_v27 = vld [vmem:[%s2025_s22 + $0x1b0] sm:$0xff]   ;;  %v240_v28 = vld [vmem:[%s2025_s22 + $0x1b8] sm:$0xff]  }
  0x20   : > { %233 = vst [vmem:[%s2030_s23 + $0xd0] sm:$0xff] %v232_v26   ;;  %v244_v29 = vld [vmem:[%s2025_s22 + $0x1c0] sm:$0xff]   ;;  %237 = vst [vmem:[%s2030_s23 + $0xd8] sm:$0xff] %v236_v27   ;;  %v248_v30 = vld [vmem:[%s2025_s22 + $0x1c8] sm:$0xff]  }
  0x21   : > { %241 = vst [vmem:[%s2030_s23 + $0xe0] sm:$0xff] %v240_v28   ;;  %245 = vst [vmem:[%s2030_s23 + $0xe8] sm:$0xff] %v244_v29   ;;  %v252_v31 = vld [vmem:[%s2025_s22 + $0x1d0] sm:$0xff]   ;;  %v256_v32 = vld [vmem:[%s2025_s22 + $0x1d8] sm:$0xff]  }
  0x22   : > { %249 = vst [vmem:[%s2030_s23 + $0xf0] sm:$0xff] %v248_v30   ;;  %253 = vst [vmem:[%s2030_s23 + $0xf8] sm:$0xff] %v252_v31   ;;  %v260_v33 = vld [vmem:[%s2025_s22 + $0x1e0] sm:$0xff]   ;;  %v264_v34 = vld [vmem:[%s2025_s22 + $0x1e8] sm:$0xff]  }
  0x23   : > { %257 = vst [vmem:[%s2030_s23 + $0x100] sm:$0xff] %v256_v32   ;;  %v268_v35 = vld [vmem:[%s2025_s22 + $0x1f0] sm:$0xff]   ;;  %261 = vst [vmem:[%s2030_s23 + $0x108] sm:$0xff] %v260_v33  }
  0x24   : > { %265 = vst [vmem:[%s2030_s23 + $0x110] sm:$0xff] %v264_v34   ;;  %269 = vst [vmem:[%s2030_s23 + $0x118] sm:$0xff] %v268_v35  }
  0x25 PF: > { %p1509_p5 = scmp.ge.s32.totalorder %s1971_s11, 1  ;;  %p437_p6 = scmp.lt.s32.totalorder %s1971_s11, 3 }
  0x27   : > { %p438_p7 = pnand %p1509_p5, %p437_p6 }
  0x28   : > { %v1911_v36 = vld [vmem:[%s2480_s1] sm:$0xff] (!%p438_p7)   ;;  %v1973_v37 = vmov (!%p438_p7), 0.0   ;;  %v1912_v38 = vld [vmem:[%s2480_s1 + $0x8] sm:$0x1f] (!%p438_p7)   ;;  %vm579_vm0 = vcmask (!%p438_p7), 1043456   ;;  %vm580_vm1 = vcmask (!%p438_p7), 1044480  }
  0x29   : > { %441 = sbr.rel (%p438_p7) target bundleno = 408 (0x198), region = 65  ;;  %1722 = vmatprep.subr.bf16.mxu0 (!%p438_p7), %v1973_v37  ;;  %1762 = vmatprep.subr.bf16.mxu1 (!%p438_p7), %v1973_v37  ;;  %s444_s28 = sand.u32 (!%p438_p7), 1, %s1963_s9   ;;  %v1974_v39 = vmov (!%p438_p7), 65535   ;;  %vm1975_vm2 = vmmov (!%p438_p7), 0   ;;  %vm551_vm3 = vcmask (!%p438_p7), 203776   ;;  %vm1423_vm4 = vcmask (!%p438_p7), 27648  }
  0x2a   : > { %1723 = vmatpush3.bf16.msra.mxu0 (!%p438_p7), %v1911_v36  ;;  %1763 = vmatpush3.bf16.msra.mxu1 (!%p438_p7), %v1911_v36  ;;  %v581_v40 = vsel (!%p438_p7), %vm579_vm0, 4294967295, %v1974_v39  ;;  %s1883_s29 = smul.u32 (!%p438_p7), 288, %s444_s28 }
  0x2b   : > { %1724 = vmatprep.subr.bf16.mxu0 (!%p438_p7), %v1973_v37  ;;  %1764 = vmatprep.subr.bf16.mxu1 (!%p438_p7), %v1973_v37  ;;  %v582_v41 = vsel (!%p438_p7), %vm580_vm1, %v581_v40, 0  ;;  %s466_s3 = smul.u32 (!%p438_p7), 18, %s1504_s12 }
  0x2c   : > { %1726 = vmatprep.mubr.msk.bf16.mxu0 (!%p438_p7), %vm1975_vm2, %v1973_v37  ;;  %1766 = vmatprep.mubr.msk.bf16.mxu1 (!%p438_p7), %vm1975_vm2, %v1973_v37  ;;  %v584_v42 = vand.u32 (!%p438_p7), %v1912_v38, %v582_v41  ;;  %s2118_s30 = scalar_lea.vmem (!%p438_p7), [#allocation2], %s1883_s29 }
  0x2d   : > { %v1913_v43 = vld [vmem:[%s2118_s30] sm:$0xff] (!%p438_p7)   ;;  %v1914_v44 = vld [vmem:[%s2118_s30 + $0x48] sm:$0xff] (!%p438_p7)   ;;  %v1916_v46 = vld [vmem:[%s2118_s30 + $0x50] sm:$0xff] (!%p438_p7)   ;;  %p467_p8 = scmp.lt.s32.totalorder (!%p438_p7), %s466_s3, 35 }
  0x2e   : > { %1725 = vmatpush3.bf16.msra.mxu0 (!%p438_p7), %v584_v42  ;;  %1765 = vmatpush3.bf16.msra.mxu1 (!%p438_p7), %v584_v42  ;;  %v1915_v45 = vld [vmem:[%s2118_s30 + $0x8] sm:$0xff] (!%p438_p7)   ;;  %v1917_v47 = vld [vmem:[%s2118_s30 + $0x10] sm:$0xff] (!%p438_p7)   ;;  %v1918_v48 = vld [vmem:[%s2118_s30 + $0x58] sm:$0xff] (!%p438_p7)  }
  0x2f   : > { %1802 = vmatprep.subr.bf16.mxu0 (!%p438_p7), %v1973_v37  ;;  %1842 = vmatprep.subr.bf16.mxu1 (!%p438_p7), %v1973_v37  ;;  %v1919_v49 = vld [vmem:[%s2118_s30 + $0x18] sm:$0xff] (!%p438_p7)   ;;  %v1920_v50 = vld [vmem:[%s2118_s30 + $0x60] sm:$0xff] (!%p438_p7)   ;;  %v1922_v52 = vld [vmem:[%s2118_s30 + $0x68] sm:$0xff] (!%p438_p7)  }
  0x30   : > { %v1921_v51 = vld [vmem:[%s2118_s30 + $0x20] sm:$0xff]   ;;  %v1923_v53 = vld [vmem:[%s2118_s30 + $0x28] sm:$0xff]   ;;  %v1924_v54 = vld [vmem:[%s2118_s30 + $0x70] sm:$0xff]   ;;  %s2490_s3 = smov (!%p467_p8, %s466_s3), 35 }
  0x31   : > { %1727 = vmatmul.mubr.msk.bf16.vlgmr.msra.gmra.mrb[0].mxu0 %vm551_vm3, %v1913_v43  ;;  %1767 = vmatmul.mubr.msk.bf16.vlgmr.msra.gmra.mrb[0].mxu1 %vm551_vm3, %v1914_v44  ;;  %v1925_v55 = vld [vmem:[%s2118_s30 + $0x30] sm:$0xff]   ;;  %v1926_v56 = vld [vmem:[%s2118_s30 + $0x78] sm:$0xff]   ;;  %v1928_v58 = vld [vmem:[%s2118_s30 + $0x80] sm:$0xff]   ;;  %s1510_s4 = sshll.u32 %s2490_s3, 2 }
  0x32   : > { %1803 = vmatpush3.bf16.msra.mxu0 %v1911_v36  ;;  %1843 = vmatpush3.bf16.msra.mxu1 %v1911_v36  ;;  %v1927_v57 = vld [vmem:[%s2118_s30 + $0x38] sm:$0xff]   ;;  %v1929_v59 = vld [vmem:[%s2118_s30 + $0x40] sm:$0xff]   ;;  %v1930_v60 = vld [vmem:[%s2118_s30 + $0x88] sm:$0xff]   ;;  %s2383_s7 = scalar_lea.vmem %s2481_s2, %s1510_s4 }
  0x33   : > { %1730 = vmatprep.mubr.msk.bf16.mxu0 %vm1975_vm2, %v1973_v37  ;;  %1770 = vmatprep.mubr.msk.bf16.mxu1 %vm1975_vm2, %v1973_v37  ;;  %v1931_v61 = vld [vmem:[%s2118_s30 + $0x90] sm:$0xff]   ;;  %v1932_v62 = vld [vmem:[%s2118_s30 + $0xd8] sm:$0xff]   ;;  %v1934_v0 = vld [vmem:[%s2118_s30 + $0xe0] sm:$0xff]  }
  0x34   : > { %1804 = vmatprep.subr.bf16.mxu0 %v1973_v37  ;;  %1844 = vmatprep.subr.bf16.mxu1 %v1973_v37  ;;  %v1933_v63 = vld [vmem:[%s2118_s30 + $0x98] sm:$0xff]   ;;  %v1935_v1 = vld [vmem:[%s2118_s30 + $0xa0] sm:$0xff]   ;;  %v1936_v2 = vld [vmem:[%s2118_s30 + $0xe8] sm:$0xff]  }
  0x35   : > { %v1937_v3 = vld [vmem:[%s2118_s30 + $0xa8] sm:$0xff]   ;;  %v1938_v4 = vld [vmem:[%s2118_s30 + $0xf0] sm:$0xff]   ;;  %v1940_v6 = vld [vmem:[%s2118_s30 + $0xf8] sm:$0xff]  }
  0x36   : > { %1805 = vmatpush3.bf16.msra.mxu0 %v584_v42  ;;  %1845 = vmatpush3.bf16.msra.mxu1 %v584_v42  ;;  %v1939_v5 = vld [vmem:[%s2118_s30 + $0xb0] sm:$0xff]   ;;  %v1941_v7 = vld [vmem:[%s2118_s30 + $0xb8] sm:$0xff]   ;;  %v1942_v8 = vld [vmem:[%s2118_s30 + $0x100] sm:$0xff]  }
  0x37   : > { %v1943_v9 = vld [vmem:[%s2118_s30 + $0xc0] sm:$0xff]   ;;  %v1944_v10 = vld [vmem:[%s2118_s30 + $0x108] sm:$0xff]   ;;  %v1946_v12 = vld [vmem:[%s2118_s30 + $0x110] sm:$0xff]  }
  0x38   : > { %v1945_v11 = vld [vmem:[%s2118_s30 + $0xc8] sm:$0xff]   ;;  %v1947_v13 = vld [vmem:[%s2118_s30 + $0xd0] sm:$0xff]   ;;  %v1948_v14 = vld [vmem:[%s2118_s30 + $0x118] sm:$0xff]  }
  0x39   : > { %1731 = vmatmul.mubr.msk.bf16.gmra.mrb[4].mxu0 %vm551_vm3, %v1915_v45  ;;  %1771 = vmatmul.mubr.msk.bf16.gmra.mrb[4].mxu1 %vm551_vm3, %v1916_v46 }
  0x3a   : > { %1734 = vmatprep.mubr.msk.bf16.mxu0 %vm1975_vm2, %v1973_v37  ;;  %1774 = vmatprep.mubr.msk.bf16.mxu1 %vm1975_vm2, %v1973_v37 }
  0x41   : > { %1735 = vmatmul.mubr.msk.bf16.gmra.mrb[8].mxu0 %vm551_vm3, %v1917_v47  ;;  %1775 = vmatmul.mubr.msk.bf16.gmra.mrb[8].mxu1 %vm551_vm3, %v1918_v48 }
  0x42   : > { %1738 = vmatprep.mubr.msk.bf16.mxu0 %vm1975_vm2, %v1973_v37  ;;  %1778 = vmatprep.mubr.msk.bf16.mxu1 %vm1975_vm2, %v1973_v37 }
  0x49   : > { %1739 = vmatmul.mubr.msk.bf16.gmra.mrb[12].mxu0 %vm551_vm3, %v1919_v49  ;;  %1779 = vmatmul.mubr.msk.bf16.gmra.mrb[12].mxu1 %vm551_vm3, %v1920_v50 }
  0x4a   : > { %1742 = vmatprep.mubr.msk.bf16.mxu0 %vm1975_vm2, %v1973_v37  ;;  %1782 = vmatprep.mubr.msk.bf16.mxu1 %vm1975_vm2, %v1973_v37 }
  0x51   : > { %1743 = vmatmul.mubr.msk.bf16.gmra.mrb[16].mxu0 %vm551_vm3, %v1921_v51  ;;  %1783 = vmatmul.mubr.msk.bf16.gmra.mrb[16].mxu1 %vm551_vm3, %v1922_v52 }
  0x52   : > { %1746 = vmatprep.mubr.msk.bf16.mxu0 %vm1975_vm2, %v1973_v37  ;;  %1786 = vmatprep.mubr.msk.bf16.mxu1 %vm1975_vm2, %v1973_v37 }
  0x59   : > { %1747 = vmatmul.mubr.msk.bf16.gmra.mrb[20].mxu0 %vm551_vm3, %v1923_v53  ;;  %1787 = vmatmul.mubr.msk.bf16.gmra.mrb[20].mxu1 %vm551_vm3, %v1924_v54 }
  0x5a   : > { %1750 = vmatprep.mubr.msk.bf16.mxu0 %vm1975_vm2, %v1973_v37  ;;  %1790 = vmatprep.mubr.msk.bf16.mxu1 %vm1975_vm2, %v1973_v37 }
  0x61   : > { %1751 = vmatmul.mubr.msk.bf16.gmra.mrb[24].mxu0 %vm551_vm3, %v1925_v55  ;;  %1791 = vmatmul.mubr.msk.bf16.gmra.mrb[24].mxu1 %vm551_vm3, %v1926_v56 }
  0x62   : > { %1754 = vmatprep.mubr.msk.bf16.mxu0 %vm1975_vm2, %v1973_v37  ;;  %1794 = vmatprep.mubr.msk.bf16.mxu1 %vm1975_vm2, %v1973_v37 }
  0x69   : > { %1755 = vmatmul.mubr.msk.bf16.gmra.mrb[28].mxu0 %vm551_vm3, %v1927_v57  ;;  %1795 = vmatmul.mubr.msk.bf16.gmra.mrb[28].mxu1 %vm551_vm3, %v1928_v58 }
  0x6a   : > { %1758 = vmatprep.mubr.msk.bf16.mxu0 %vm1975_vm2, %v1973_v37  ;;  %1798 = vmatprep.mubr.msk.bf16.mxu1 %vm1975_vm2, %v1973_v37 }
  0x71   : > { %1759 = vmatmul.mubr.msk.bf16.gmra.mrb[32].mxu0 %vm551_vm3, %v1929_v59  ;;  %1799 = vmatmul.mubr.msk.bf16.gmra.mrb[32].mxu1 %vm551_vm3, %v1930_v60 }
  0x72   : > { %1806 = vmatprep.mubr.msk.bf16.mxu0 %vm1975_vm2, %v1973_v37  ;;  %1846 = vmatprep.mubr.msk.bf16.mxu1 %vm1975_vm2, %v1973_v37 }
  0x79   : > { %1807 = vmatmul.mubr.msk.bf16.vlgmr.msra.gmra.mrb[36].mxu0 %vm551_vm3, %v1931_v61  ;;  %1847 = vmatmul.mubr.msk.bf16.vlgmr.msra.gmra.mrb[36].mxu1 %vm551_vm3, %v1932_v62 }
  0x7a   : > { %1810 = vmatprep.mubr.msk.bf16.mxu0 %vm1975_vm2, %v1973_v37  ;;  %1850 = vmatprep.mubr.msk.bf16.mxu1 %vm1975_vm2, %v1973_v37 }
  0x81   : > { %1811 = vmatmul.mubr.msk.bf16.gmra.mrb[40].mxu0 %vm551_vm3, %v1933_v63  ;;  %1851 = vmatmul.mubr.msk.bf16.gmra.mrb[40].mxu1 %vm551_vm3, %v1934_v0 }
  0x82   : > { %1814 = vmatprep.mubr.msk.bf16.mxu0 %vm1975_vm2, %v1973_v37  ;;  %1854 = vmatprep.mubr.msk.bf16.mxu1 %vm1975_vm2, %v1973_v37 }
  0x89   : > { %1815 = vmatmul.mubr.msk.bf16.gmra.mrb[44].mxu0 %vm551_vm3, %v1935_v1  ;;  %1855 = vmatmul.mubr.msk.bf16.gmra.mrb[44].mxu1 %vm551_vm3, %v1936_v2 }
  0x8a   : > { %1818 = vmatprep.mubr.msk.bf16.mxu0 %vm1975_vm2, %v1973_v37  ;;  %1858 = vmatprep.mubr.msk.bf16.mxu1 %vm1975_vm2, %v1973_v37 }
  0x91   : > { %1819 = vmatmul.mubr.msk.bf16.gmra.mrb[48].mxu0 %vm551_vm3, %v1937_v3  ;;  %1859 = vmatmul.mubr.msk.bf16.gmra.mrb[48].mxu1 %vm551_vm3, %v1938_v4 }
  0x92   : > { %1822 = vmatprep.mubr.msk.bf16.mxu0 %vm1975_vm2, %v1973_v37  ;;  %1862 = vmatprep.mubr.msk.bf16.mxu1 %vm1975_vm2, %v1973_v37 }
  0x99   : > { %1823 = vmatmul.mubr.msk.bf16.gmra.mrb[52].mxu0 %vm551_vm3, %v1939_v5  ;;  %1863 = vmatmul.mubr.msk.bf16.gmra.mrb[52].mxu1 %vm551_vm3, %v1940_v6 }
  0x9a   : > { %1826 = vmatprep.mubr.msk.bf16.mxu0 %vm1975_vm2, %v1973_v37  ;;  %1866 = vmatprep.mubr.msk.bf16.mxu1 %vm1975_vm2, %v1973_v37 }
  0xa1   : > { %1827 = vmatmul.mubr.msk.bf16.gmra.mrb[56].mxu0 %vm551_vm3, %v1941_v7  ;;  %1867 = vmatmul.mubr.msk.bf16.gmra.mrb[56].mxu1 %vm551_vm3, %v1942_v8 }
  0xa2   : > { %1830 = vmatprep.mubr.msk.bf16.mxu0 %vm1975_vm2, %v1973_v37  ;;  %1870 = vmatprep.mubr.msk.bf16.mxu1 %vm1975_vm2, %v1973_v37 }
  0xa9   : > { %1831 = vmatmul.mubr.msk.bf16.gmra.mrb[60].mxu0 %vm551_vm3, %v1943_v9  ;;  %1871 = vmatmul.mubr.msk.bf16.gmra.mrb[60].mxu1 %vm551_vm3, %v1944_v10 }
  0xaa   : > { %1834 = vmatprep.mubr.msk.bf16.mxu0 %vm1975_vm2, %v1973_v37  ;;  %1874 = vmatprep.mubr.msk.bf16.mxu1 %vm1975_vm2, %v1973_v37 }
  0xb1   : > { %1835 = vmatmul.mubr.msk.bf16.gmra.mrb[64].mxu0 %vm551_vm3, %v1945_v11  ;;  %1875 = vmatmul.mubr.msk.bf16.gmra.mrb[64].mxu1 %vm551_vm3, %v1946_v12 }
  0xb2   : > { %1838 = vmatprep.mubr.msk.bf16.mxu0 %vm1975_vm2, %v1973_v37  ;;  %1878 = vmatprep.mubr.msk.bf16.mxu1 %vm1975_vm2, %v1973_v37 }
  0xb9   : > { %1839 = vmatmul.mubr.msk.bf16.gmra.mrb[68].mxu0 %vm551_vm3, %v1947_v13  ;;  %1879 = vmatmul.mubr.msk.bf16.gmra.mrb[68].mxu1 %vm551_vm3, %v1948_v14 }
 0x104   : > { %v2264_v15 = vpop.f32.mrb[0].mxu0  ;;  %v2266_v16 = vpop.f32.mrb[0].mxu1 }
 0x105   : > { %v1279_v17 = vmax.f32 %v2264_v15, %v2266_v16  ;;  %v1728_v18 = vpop.f32.mrb[1].mxu0  ;;  %v1768_v19 = vpop.f32.mrb[1].mxu1 }
 0x106   : > { %v2270_v20 = vpop.f32.mrb[2].mxu0  ;;  %v2272_v21 = vpop.f32.mrb[2].mxu1 }
 0x107   : > { %v1280_v22 = vmax.f32 %v2270_v20, %v2272_v21  ;;  %v1729_v23 = vpop.f32.mrb[3].mxu0  ;;  %v1769_v24 = vpop.f32.mrb[3].mxu1 }
 0x10c   : > { %v2276_v25 = vpop.f32.mrb[4].mxu0  ;;  %v2278_v26 = vpop.f32.mrb[4].mxu1 }
 0x10d   : > { %v1281_v27 = vmax.f32 %v2276_v25, %v2278_v26  ;;  %v1732_v28 = vpop.f32.mrb[5].mxu0  ;;  %v1772_v29 = vpop.f32.mrb[5].mxu1 }
 0x10e   : > { %v2282_v30 = vpop.f32.mrb[6].mxu0  ;;  %v2284_v31 = vpop.f32.mrb[6].mxu1 }
 0x10f   : > { %v1282_v32 = vmax.f32 %v2282_v30, %v2284_v31  ;;  %v1733_v33 = vpop.f32.mrb[7].mxu0  ;;  %v1773_v34 = vpop.f32.mrb[7].mxu1 }
 0x114   : > { %v2288_v35 = vpop.f32.mrb[8].mxu0  ;;  %v2290_v36 = vpop.f32.mrb[8].mxu1 }
 0x115   : > { %v1283_v37 = vmax.f32 %v2288_v35, %v2290_v36  ;;  %v1736_v38 = vpop.f32.mrb[9].mxu0  ;;  %v1776_v39 = vpop.f32.mrb[9].mxu1 }
 0x116   : > { %v2294_v40 = vpop.f32.mrb[10].mxu0  ;;  %v2296_v41 = vpop.f32.mrb[10].mxu1 }
 0x117   : > { %v1284_v42 = vmax.f32 %v2294_v40, %v2296_v41  ;;  %v1737_v43 = vpop.f32.mrb[11].mxu0  ;;  %v1777_v44 = vpop.f32.mrb[11].mxu1 }
 0x11c   : > { %v2300_v45 = vpop.f32.mrb[12].mxu0  ;;  %v2302_v46 = vpop.f32.mrb[12].mxu1 }
 0x11d   : > { %v1285_v47 = vmax.f32 %v2300_v45, %v2302_v46  ;;  %v1740_v48 = vpop.f32.mrb[13].mxu0  ;;  %v1780_v49 = vpop.f32.mrb[13].mxu1 }
 0x11e   : > { %v2306_v50 = vpop.f32.mrb[14].mxu0  ;;  %v2308_v51 = vpop.f32.mrb[14].mxu1 }
 0x11f   : > { %v1286_v52 = vmax.f32 %v2306_v50, %v2308_v51  ;;  %v1741_v53 = vpop.f32.mrb[15].mxu0  ;;  %v1781_v54 = vpop.f32.mrb[15].mxu1 }
 0x124   : > { %v2312_v55 = vpop.f32.mrb[16].mxu0  ;;  %v2314_v56 = vpop.f32.mrb[16].mxu1 }
 0x125   : > { %v1287_v57 = vmax.f32 %v2312_v55, %v2314_v56  ;;  %v1744_v58 = vpop.f32.mrb[17].mxu0  ;;  %v1784_v59 = vpop.f32.mrb[17].mxu1 }
 0x126   : > { %v2318_v60 = vpop.f32.mrb[18].mxu0  ;;  %v2320_v61 = vpop.f32.mrb[18].mxu1 }
 0x127   : > { %v1288_v62 = vmax.f32 %v2318_v60, %v2320_v61  ;;  %v1745_v63 = vpop.f32.mrb[19].mxu0  ;;  %v1785_v0 = vpop.f32.mrb[19].mxu1 }
 0x12c   : > { %v2324_v1 = vpop.f32.mrb[20].mxu0  ;;  %v2326_v2 = vpop.f32.mrb[20].mxu1 }
 0x12d   : > { %v1289_v3 = vmax.f32 %v2324_v1, %v2326_v2  ;;  %v1748_v4 = vpop.f32.mrb[21].mxu0  ;;  %v1788_v5 = vpop.f32.mrb[21].mxu1 }
 0x12e   : > { %v2330_v6 = vpop.f32.mrb[22].mxu0  ;;  %v2332_v7 = vpop.f32.mrb[22].mxu1 }
 0x12f   : > { %v1290_v8 = vmax.f32 %v2330_v6, %v2332_v7  ;;  %v1749_v9 = vpop.f32.mrb[23].mxu0  ;;  %v1789_v10 = vpop.f32.mrb[23].mxu1 }
 0x134   : > { %v2336_v11 = vpop.f32.mrb[24].mxu0  ;;  %v2338_v12 = vpop.f32.mrb[24].mxu1 }
 0x135   : > { %v1291_v13 = vmax.f32 %v2336_v11, %v2338_v12  ;;  %v1752_v14 = vpop.f32.mrb[25].mxu0  ;;  %v1792_v18 = vpop.f32.mrb[25].mxu1 }
 0x136   : > { %v2342_v19 = vpop.f32.mrb[26].mxu0  ;;  %v2344_v23 = vpop.f32.mrb[26].mxu1 }
 0x137   : > { %v1292_v24 = vmax.f32 %v2342_v19, %v2344_v23  ;;  %v1753_v28 = vpop.f32.mrb[27].mxu0  ;;  %v1793_v29 = vpop.f32.mrb[27].mxu1 }
 0x13c   : > { %v2348_v33 = vpop.f32.mrb[28].mxu0  ;;  %v2350_v34 = vpop.f32.mrb[28].mxu1 }
 0x13d   : > { %v1756_v39 = vpop.f32.mrb[29].mxu0  ;;  %v1796_v43 = vpop.f32.mrb[29].mxu1 }
 0x13e   : > { %v2354_v44 = vpop.f32.mrb[30].mxu0  ;;  %v2356_v48 = vpop.f32.mrb[30].mxu1 }
 0x13f   : > { %v1757_v53 = vpop.f32.mrb[31].mxu0  ;;  %v1797_v54 = vpop.f32.mrb[31].mxu1 }
 0x144   : > { %v2362_v58 = vpop.f32.mrb[32].mxu0  ;;  %v2364_v59 = vpop.f32.mrb[32].mxu1 }
 0x145   : > { %v1760_v0 = vpop.f32.mrb[33].mxu0  ;;  %v1800_v4 = vpop.f32.mrb[33].mxu1 }
 0x146   : > { %v2368_v5 = vpop.f32.mrb[34].mxu0  ;;  %v2370_v9 = vpop.f32.mrb[34].mxu1 }
 0x147   : > { %v1761_v14 = vpop.f32.mrb[35].mxu0  ;;  %v1801_v18 = vpop.f32.mrb[35].mxu1 }
 0x14c   : > { %v1012_v28 = vpop.f32.mrb[36].mxu0  ;;  %v1208_v29 = vpop.f32.mrb[36].mxu1 }
 0x14d   : > { %v1297_v39 = vmax.f32 %v1012_v28, %v1208_v29  ;;  %v1808_v43 = vpop.f32.mrb[37].mxu0  ;;  %v1848_v53 = vpop.f32.mrb[37].mxu1 }
 0x14e   : > { %v1015_v54 = vpop.f32.mrb[38].mxu0  ;;  %v1211_v63 = vpop.f32.mrb[38].mxu1 }
 0x14f   : > { %v1315_v0 = vmax.f32 %v1279_v17, %v1297_v39  ;;  %v1298_v4 = vmax.f32 %v1015_v54, %v1211_v63  ;;  %v1809_v49 = vpop.f32.mrb[39].mxu0  ;;  %v1849_v38 = vpop.f32.mrb[39].mxu1 }
 0x151   : > { %v1333_v10 = vmax.f32 %v1315_v0, 0.0  ;;  %v1316_v14 = vmax.f32 %v1280_v22, %v1298_v4 }
 0x153   : > { %v1660_v18 = vpack.c.bf16 %v1333_v10, %v1333_v10  ;;  %v1334_v28 = vmax.f32 %v1316_v14, 0.0 }
 0x154   : > { %v1020_v15 = vpop.f32.mrb[40].mxu0  ;;  %v1216_v16 = vpop.f32.mrb[40].mxu1 }
 0x155   : > { %1424 = vst.msk [vmem:[%s2383_s7] sm:$0xf] %vm1423_vm4, %v1660_v18  ;;  %v1661_v17 = vpack.c.bf16 %v1334_v28, %v1334_v28  ;;  %v1299_v38 = vmax.f32 %v1020_v15, %v1216_v16  ;;  %v1812_v49 = vpop.f32.mrb[41].mxu0  ;;  %v1852_v20 = vpop.f32.mrb[41].mxu1 }
 0x156   : > { %v1023_v21 = vpop.f32.mrb[42].mxu0  ;;  %v1219_v22 = vpop.f32.mrb[42].mxu1 }
 0x157   : > { %1425 = vst.msk [vmem:[%s2383_s7 + $0x4] sm:$0xf] %vm1423_vm4, %v1661_v17  ;;  %v1317_v63 = vmax.f32 %v1281_v27, %v1299_v38  ;;  %v1300_v29 = vmax.f32 %v1023_v21, %v1219_v22  ;;  %v1813_v10 = vpop.f32.mrb[43].mxu0  ;;  %v1853_v39 = vpop.f32.mrb[43].mxu1 }
 0x159   : > { %v1335_v43 = vmax.f32 %v1317_v63, 0.0  ;;  %v1318_v53 = vmax.f32 %v1282_v32, %v1300_v29 }
 0x15b   : > { %v1662_v54 = vpack.c.bf16 %v1335_v43, %v1335_v43  ;;  %v1336_v0 = vmax.f32 %v1318_v53, 0.0 }
 0x15c   : > { %v1028_v4 = vpop.f32.mrb[44].mxu0  ;;  %v1224_v14 = vpop.f32.mrb[44].mxu1 }
 0x15d   : > { %1426 = vst.msk [vmem:[%s2383_s7 + $0x8] sm:$0xf] %vm1423_vm4, %v1662_v54  ;;  %v1663_v18 = vpack.c.bf16 %v1336_v0, %v1336_v0  ;;  %v1301_v28 = vmax.f32 %v1028_v4, %v1224_v14  ;;  %v1816_v25 = vpop.f32.mrb[45].mxu0  ;;  %v1856_v26 = vpop.f32.mrb[45].mxu1 }
 0x15e   : > { %v1031_v27 = vpop.f32.mrb[46].mxu0  ;;  %v1227_v15 = vpop.f32.mrb[46].mxu1 }
 0x15f   : > { %1427 = vst.msk [vmem:[%s2383_s7 + $0xc] sm:$0xf] %vm1423_vm4, %v1663_v18  ;;  %v1319_v30 = vmax.f32 %v1283_v37, %v1301_v28  ;;  %v1302_v31 = vmax.f32 %v1031_v27, %v1227_v15  ;;  %v1817_v32 = vpop.f32.mrb[47].mxu0  ;;  %v1857_v16 = vpop.f32.mrb[47].mxu1 }
 0x161   : > { %v1337_v17 = vmax.f32 %v1319_v30, 0.0  ;;  %v1320_v38 = vmax.f32 %v1284_v42, %v1302_v31 }
 0x163   : > { %v1664_v49 = vpack.c.bf16 %v1337_v17, %v1337_v17  ;;  %v1338_v20 = vmax.f32 %v1320_v38, 0.0 }
 0x164   : > { %v1036_v21 = vpop.f32.mrb[48].mxu0  ;;  %v1232_v22 = vpop.f32.mrb[48].mxu1 }
 0x165   : > { %1428 = vst.msk [vmem:[%s2383_s7 + $0x10] sm:$0xf] %vm1423_vm4, %v1664_v49  ;;  %v1665_v63 = vpack.c.bf16 %v1338_v20, %v1338_v20  ;;  %v1303_v29 = vmax.f32 %v1036_v21, %v1232_v22  ;;  %v1820_v35 = vpop.f32.mrb[49].mxu0  ;;  %v1860_v36 = vpop.f32.mrb[49].mxu1 }
 0x166   : > { %v1039_v37 = vpop.f32.mrb[50].mxu0  ;;  %v1235_v10 = vpop.f32.mrb[50].mxu1 }
 0x167   : > { %1429 = vst.msk [vmem:[%s2383_s7 + $0x14] sm:$0xf] %vm1423_vm4, %v1665_v63  ;;  %v1321_v40 = vmax.f32 %v1285_v47, %v1303_v29  ;;  %v1304_v41 = vmax.f32 %v1039_v37, %v1235_v10  ;;  %v1821_v42 = vpop.f32.mrb[51].mxu0  ;;  %v1861_v39 = vpop.f32.mrb[51].mxu1 }
 0x169   : > { %v1339_v43 = vmax.f32 %v1321_v40, 0.0  ;;  %v1322_v53 = vmax.f32 %v1286_v52, %v1304_v41 }
 0x16b   : > { %v1666_v54 = vpack.c.bf16 %v1339_v43, %v1339_v43  ;;  %v1340_v0 = vmax.f32 %v1322_v53, 0.0 }
 0x16c   : > { %v1044_v4 = vpop.f32.mrb[52].mxu0  ;;  %v1240_v14 = vpop.f32.mrb[52].mxu1 }
 0x16d   : > { %1430 = vst.msk [vmem:[%s2383_s7 + $0x18] sm:$0xf] %vm1423_vm4, %v1666_v54  ;;  %v1667_v18 = vpack.c.bf16 %v1340_v0, %v1340_v0  ;;  %v1305_v28 = vmax.f32 %v1044_v4, %v1240_v14  ;;  %v1824_v45 = vpop.f32.mrb[53].mxu0  ;;  %v1864_v46 = vpop.f32.mrb[53].mxu1 }
 0x16e   : > { %v1047_v47 = vpop.f32.mrb[54].mxu0  ;;  %v1243_v25 = vpop.f32.mrb[54].mxu1 }
 0x16f   : > { %1431 = vst.msk [vmem:[%s2383_s7 + $0x1c] sm:$0xf] %vm1423_vm4, %v1667_v18  ;;  %v1323_v50 = vmax.f32 %v1287_v57, %v1305_v28  ;;  %v1306_v51 = vmax.f32 %v1047_v47, %v1243_v25  ;;  %v1825_v52 = vpop.f32.mrb[55].mxu0  ;;  %v1865_v26 = vpop.f32.mrb[55].mxu1  ;;  %v2482_v28 = vmax.f32 %v2348_v33, %v2350_v34  ;;  %v2483_v47 = vmax.f32 %v2354_v44, %v2356_v48 }
 0x170   : > { %v2484_v44 = vmax.f32 %v2362_v58, %v2364_v59 }
 0x171   : > { %v1341_v27 = vmax.f32 %v1323_v50, 0.0  ;;  %v1324_v15 = vmax.f32 %v1288_v62, %v1306_v51 }
 0x173   : > { %v1668_v30 = vpack.c.bf16 %v1341_v27, %v1341_v27  ;;  %v1342_v31 = vmax.f32 %v1324_v15, 0.0 }
 0x174   : > { %v1052_v32 = vpop.f32.mrb[56].mxu0  ;;  %v1248_v16 = vpop.f32.mrb[56].mxu1 }
 0x175   : > { %1432 = vst.msk [vmem:[%s2383_s7 + $0x20] sm:$0xf] %vm1423_vm4, %v1668_v30  ;;  %v1669_v17 = vpack.c.bf16 %v1342_v31, %v1342_v31  ;;  %v1307_v38 = vmax.f32 %v1052_v32, %v1248_v16  ;;  %v1828_v55 = vpop.f32.mrb[57].mxu0  ;;  %v1868_v56 = vpop.f32.mrb[57].mxu1 }
 0x176   : > { %v1055_v57 = vpop.f32.mrb[58].mxu0  ;;  %v1251_v49 = vpop.f32.mrb[58].mxu1  ;;  %v2485_v55 = vmax.f32 %v2368_v5, %v2370_v9 }
 0x177   : > { %1433 = vst.msk [vmem:[%s2383_s7 + $0x24] sm:$0xf] %vm1423_vm4, %v1669_v17  ;;  %v1325_v60 = vmax.f32 %v1289_v3, %v1307_v38  ;;  %v1308_v61 = vmax.f32 %v1055_v57, %v1251_v49  ;;  %v1829_v62 = vpop.f32.mrb[59].mxu0  ;;  %v1869_v20 = vpop.f32.mrb[59].mxu1 }
 0x179   : > { %v1343_v21 = vmax.f32 %v1325_v60, 0.0  ;;  %v1326_v22 = vmax.f32 %v1290_v8, %v1308_v61 }
 0x17b   : > { %v1670_v63 = vpack.c.bf16 %v1343_v21, %v1343_v21  ;;  %v1344_v29 = vmax.f32 %v1326_v22, 0.0 }
 0x17c   : > { %v1060_v35 = vpop.f32.mrb[60].mxu0  ;;  %v1256_v36 = vpop.f32.mrb[60].mxu1 }
 0x17d   : > { %1434 = vst.msk [vmem:[%s2383_s7 + $0x28] sm:$0xf] %vm1423_vm4, %v1670_v63  ;;  %v1671_v37 = vpack.c.bf16 %v1344_v29, %v1344_v29  ;;  %v1309_v10 = vmax.f32 %v1060_v35, %v1256_v36  ;;  %v1832_v1 = vpop.f32.mrb[61].mxu0  ;;  %v1872_v2 = vpop.f32.mrb[61].mxu1 }
 0x17e   : > { %v1063_v3 = vpop.f32.mrb[62].mxu0  ;;  %v1259_v40 = vpop.f32.mrb[62].mxu1 }
 0x17f   : > { %1435 = vst.msk [vmem:[%s2383_s7 + $0x2c] sm:$0xf] %vm1423_vm4, %v1671_v37  ;;  %v1327_v6 = vmax.f32 %v1291_v13, %v1309_v10  ;;  %v1310_v7 = vmax.f32 %v1063_v3, %v1259_v40  ;;  %v1833_v8 = vpop.f32.mrb[63].mxu0  ;;  %v1873_v41 = vpop.f32.mrb[63].mxu1 }
 0x181   : > { %v1345_v42 = vmax.f32 %v1327_v6, 0.0  ;;  %v1328_v39 = vmax.f32 %v1292_v24, %v1310_v7 }
 0x183   : > { %v1672_v43 = vpack.c.bf16 %v1345_v42, %v1345_v42  ;;  %v1346_v53 = vmax.f32 %v1328_v39, 0.0 }
 0x184   : > { %v1068_v54 = vpop.f32.mrb[64].mxu0  ;;  %v1264_v0 = vpop.f32.mrb[64].mxu1 }
 0x185   : > { %1436 = vst.msk [vmem:[%s2383_s7 + $0x30] sm:$0xf] %vm1423_vm4, %v1672_v43  ;;  %v1673_v4 = vpack.c.bf16 %v1346_v53, %v1346_v53  ;;  %v1311_v14 = vmax.f32 %v1068_v54, %v1264_v0  ;;  %v1836_v11 = vpop.f32.mrb[65].mxu0  ;;  %v1876_v12 = vpop.f32.mrb[65].mxu1 }
 0x186   : > { %v1071_v13 = vpop.f32.mrb[66].mxu0  ;;  %v1267_v18 = vpop.f32.mrb[66].mxu1 }
 0x187   : > { %1437 = vst.msk [vmem:[%s2383_s7 + $0x34] sm:$0xf] %vm1423_vm4, %v1673_v4  ;;  %v1329_v19 = vmax.f32 %v2482_v28, %v1311_v14  ;;  %v1312_v23 = vmax.f32 %v1071_v13, %v1267_v18  ;;  %v1837_v24 = vpop.f32.mrb[67].mxu0  ;;  %v1877_v45 = vpop.f32.mrb[67].mxu1 }
 0x189   : > { %v1347_v46 = vmax.f32 %v1329_v19, 0.0  ;;  %v1330_v25 = vmax.f32 %v2483_v47, %v1312_v23 }
 0x18b   : > { %v1674_v50 = vpack.c.bf16 %v1347_v46, %v1347_v46  ;;  %v1348_v51 = vmax.f32 %v1330_v25, 0.0 }
 0x18c   : > { %v1076_v52 = vpop.f32.mrb[68].mxu0  ;;  %v1272_v26 = vpop.f32.mrb[68].mxu1 }
 0x18d   : > { %1438 = vst.msk [vmem:[%s2383_s7 + $0x38] sm:$0xf] %vm1423_vm4, %v1674_v50  ;;  %v1675_v27 = vpack.c.bf16 %v1348_v51, %v1348_v51  ;;  %v1313_v15 = vmax.f32 %v1076_v52, %v1272_v26  ;;  %v1840_v33 = vpop.f32.mrb[69].mxu0  ;;  %v1880_v34 = vpop.f32.mrb[69].mxu1 }
 0x18e   : > { %v1079_v30 = vpop.f32.mrb[70].mxu0  ;;  %v1275_v31 = vpop.f32.mrb[70].mxu1 }
 0x18f   : > { %1439 = vst.msk [vmem:[%s2383_s7 + $0x3c] sm:$0xf] %vm1423_vm4, %v1675_v27  ;;  %v1331_v48 = vmax.f32 %v2484_v44, %v1313_v15  ;;  %v1314_v32 = vmax.f32 %v1079_v30, %v1275_v31  ;;  %v1841_v16 = vpop.f32.mrb[71].mxu0  ;;  %v1881_v17 = vpop.f32.mrb[71].mxu1 }
 0x191   : > { %v1349_v38 = vmax.f32 %v1331_v48, 0.0  ;;  %v1332_v56 = vmax.f32 %v2485_v55, %v1314_v32 }
 0x193   : > { %v1676_v57 = vpack.c.bf16 %v1349_v38, %v1349_v38  ;;  %v1350_v49 = vmax.f32 %v1332_v56, 0.0 }
 0x195   : > { %1440 = vst.msk [vmem:[%s2383_s7 + $0x40] sm:$0xf] %vm1423_vm4, %v1676_v57  ;;  %v1677_v60 = vpack.c.bf16 %v1350_v49, %v1350_v49 }
 0x197   : > { %1441 = vst.msk [vmem:[%s2383_s7 + $0x44] sm:$0xf] %vm1423_vm4, %v1677_v60 }
 0x198 PF: > { %p9_p9 = scmp.ge.s32.totalorder %s2008_s13, 4   ;;  %s2486_s9 = smov %s1967_s10 }
 0x199   : > { %s2487_s10 = smov %s2017_s16  ;;  %s2488_s11 = smov %s2008_s13 }
 0x19a   :  { %11 = sbr.rel (!%p9_p9) target bundleno = 2 (0x2), region = 107 }

// kernel: net_forward.3
= control target key start
LH: loop header
LB: loop body
LE: loop exit
PB: predicated region body
PF: predicated region fallthrough
CT: control target
= control target key end

     0   :  { %vm132_vm0 = vcmask 818176   ;;  %vm157_vm1 = vcmask 1041408   ;;  %v2283_v40 = vmov 0.0   ;;  %vm873_vm2 = vcmask 1043456   ;;  %s2757_s1 = inlined_call_operand.vmem [shape: bf16[100,8], index: 1, kind: input, shape index: {}]   ;;  %s2758_s0 = inlined_call_operand.vmem [shape: bf16[4,16,8,100], index: 0, kind: input, shape index: {}]   ;;  %s2759_s2 = inlined_call_operand.vmem [shape: bf16[16,8,32], index: 2, kind: input, shape index: {}]   ;;  %s2760_s4 = inlined_call_operand.vmem [shape: bf16[32,10], index: 4, kind: input, shape index: {}]   ;;  %s2761_s3 = inlined_call_operand.vmem [shape: f32[1,32], index: 3, kind: input, shape index: {}]   ;;  %s2762_s5 = inlined_call_operand.vmem [shape: f32[1,10], index: 5, kind: input, shape index: {}]   ;;  %s2763_s6 = inlined_call_operand.vmem [shape: f32[8,10], index: 6, kind: output, shape index: {}]  }
   0x1   :  { %v2238_v0 = vld [vmem:[%s2757_s1] sm:$0xff]   ;;  %v2239_v1 = vld [vmem:[%s2757_s1 + $0x8] sm:$0xff]   ;;  %v2240_v2 = vld [vmem:[%s2757_s1 + $0x10] sm:$0xff]   ;;  %vm2284_vm3 = vmmov 0   ;;  %vm869_vm4 = vcmask 64512   ;;  %vm1696_vm5 = vcmask 261120  }
   0x2   :  { %2008 = vmatprep.subr.bf16.mxu0 %v2238_v0  ;;  %2038 = vmatprep.subr.bf16.mxu1 %v2238_v0  ;;  %v2332_v3 = vld [vmem:[%s2757_s1 + $0x18] sm:$0xff]   ;;  %v2245_v4 = vld [vmem:[%s2758_s0] sm:$0xff]   ;;  %v2243_v7 = vld [vmem:[%s2757_s1 + $0x28] sm:$0xff]   ;;  %vm1740_vm6 = vcmask 80896  }
   0x3   :  { %2009 = vmatpush3.bf16.msra.mxu0 %v2238_v0  ;;  %2039 = vmatpush3.bf16.msra.mxu1 %v2238_v0  ;;  %v2246_v5 = vld [vmem:[%s2758_s0 + $0x40] sm:$0xff]   ;;  %v2355_v8 = vld [vmem:[%s2757_s1 + $0x30] ss:$0 sps:$4 sm:$0x33]   ;;  %v2247_v10 = vld [vmem:[%s2758_s0 + $0x8] sm:$0xff]  }
   0x4   :  { %2010 = vmatprep.subr.bf16.mxu0 %v2239_v1  ;;  %2040 = vmatprep.subr.bf16.mxu1 %v2239_v1  ;;  %v2242_v6 = vld [vmem:[%s2757_s1 + $0x20] sm:$0xff]   ;;  %v159_v9 = vsel %vm157_vm1, %v2355_v8, 0  ;;  %v2248_v11 = vld [vmem:[%s2758_s0 + $0x48] sm:$0xff]   ;;  %v2249_v12 = vld [vmem:[%s2758_s0 + $0x10] sm:$0xff]  }
   0x5   :  { %2022 = vmatprep.mubr.msk.bf16.mxu0 %vm132_vm0, %v2245_v4  ;;  %2052 = vmatprep.mubr.msk.bf16.mxu1 %vm132_vm0, %v2246_v5  ;;  %v2250_v13 = vld [vmem:[%s2758_s0 + $0x50] sm:$0xff]   ;;  %v2251_v14 = vld [vmem:[%s2758_s0 + $0x18] sm:$0xff]   ;;  %v2253_v16 = vld [vmem:[%s2758_s0 + $0x20] sm:$0xff]  }
   0x6   :  { %v2252_v15 = vld [vmem:[%s2758_s0 + $0x58] sm:$0xff]   ;;  %v2254_v17 = vld [vmem:[%s2758_s0 + $0x60] sm:$0xff]   ;;  %v2255_v18 = vld [vmem:[%s2758_s0 + $0x28] sm:$0xff]  }
   0x7   :  { %2011 = vmatpush3.bf16.msra.mxu0 %v2239_v1  ;;  %2041 = vmatpush3.bf16.msra.mxu1 %v2239_v1  ;;  %v2256_v19 = vld [vmem:[%s2758_s0 + $0x68] sm:$0xff]   ;;  %v2257_v20 = vld [vmem:[%s2758_s0 + $0x30] sm:$0xff]   ;;  %v2259_v22 = vld [vmem:[%s2758_s0 + $0x38] sm:$0xff]  }
   0x8   :  { %2012 = vmatprep.subr.bf16.mxu0 %v2240_v2  ;;  %2042 = vmatprep.subr.bf16.mxu1 %v2240_v2  ;;  %v2258_v21 = vld [vmem:[%s2758_s0 + $0x70] sm:$0xff]   ;;  %v2260_v23 = vld [vmem:[%s2758_s0 + $0x78] sm:$0xff]   ;;  %v2261_v24 = vld [vmem:[%s2758_s0 + $0x80] sm:$0xff]  }
   0x9   :  { %v2262_v25 = vld [vmem:[%s2758_s0 + $0xc0] sm:$0xff]   ;;  %v2263_v26 = vld [vmem:[%s2758_s0 + $0x88] sm:$0xff]   ;;  %v2265_v28 = vld [vmem:[%s2758_s0 + $0x90] sm:$0xff]  }
   0xa   :  { %v2264_v27 = vld [vmem:[%s2758_s0 + $0xc8] sm:$0xff]   ;;  %v2266_v29 = vld [vmem:[%s2758_s0 + $0xd0] sm:$0xff]   ;;  %v2267_v30 = vld [vmem:[%s2758_s0 + $0x98] sm:$0xff]  }
   0xb   :  { %2013 = vmatpush3.bf16.msra.mxu0 %v2240_v2  ;;  %2043 = vmatpush3.bf16.msra.mxu1 %v2240_v2  ;;  %v2268_v31 = vld [vmem:[%s2758_s0 + $0xd8] sm:$0xff]   ;;  %v2269_v32 = vld [vmem:[%s2758_s0 + $0xa0] sm:$0xff]   ;;  %v2271_v34 = vld [vmem:[%s2758_s0 + $0xa8] sm:$0xff]  }
   0xc   :  { %2014 = vmatprep.subr.bf16.mxu0 %v2332_v3  ;;  %2044 = vmatprep.subr.bf16.mxu1 %v2332_v3  ;;  %v2270_v33 = vld [vmem:[%s2758_s0 + $0xe0] sm:$0xff]   ;;  %v2272_v35 = vld [vmem:[%s2758_s0 + $0xe8] sm:$0xff]   ;;  %v2273_v36 = vld [vmem:[%s2758_s0 + $0xb0] sm:$0xff]  }
   0xd   :  { %v2274_v37 = vld [vmem:[%s2758_s0 + $0xf0] sm:$0xff]   ;;  %v2275_v38 = vld [vmem:[%s2758_s0 + $0xb8] sm:$0xff]   ;;  %v1877_v41 = vld [vmem:[%s2759_s2 + $0x4] sm:$0xf] }
   0xe   :  { %v2276_v39 = vld [vmem:[%s2758_s0 + $0xf8] sm:$0xff]   ;;  %v875_v42 = vsel %vm873_vm2, %v1877_v41, 0  ;;  %v864_v43 = vld [vmem:[%s2759_s2] sm:$0xf] }
   0xf   :  { %2015 = vmatpush3.bf16.msra.mxu0 %v2332_v3  ;;  %2045 = vmatpush3.bf16.msra.mxu1 %v2332_v3  ;;  %v921_v44 = vsel %vm873_vm2, %v864_v43, 0 }
  0x10   :  { %2016 = vmatprep.subr.bf16.mxu0 %v2242_v6  ;;  %2046 = vmatprep.subr.bf16.mxu1 %v2242_v6 }
  0x13   :  { %2017 = vmatpush3.bf16.msra.mxu0 %v2242_v6  ;;  %2047 = vmatpush3.bf16.msra.mxu1 %v2242_v6 }
  0x14   :  { %2018 = vmatprep.subr.bf16.mxu0 %v2243_v7  ;;  %2048 = vmatprep.subr.bf16.mxu1 %v2243_v7 }
  0x17   :  { %2019 = vmatpush3.bf16.msra.mxu0 %v2243_v7  ;;  %2049 = vmatpush3.bf16.msra.mxu1 %v2243_v7 }
  0x18   :  { %2232 = vmatprep.subr.msk.bf16.mxu0 %vm157_vm1, %v2355_v8  ;;  %2233 = vmatprep.subr.msk.bf16.mxu1 %vm157_vm1, %v2355_v8 }
  0x1b   :  { %2021 = vmatpush3.bf16.msra.mxu0 %v159_v9  ;;  %2051 = vmatpush3.bf16.msra.mxu1 %v159_v9 }
  0x1c   :  { %2068 = vmatprep.subr.bf16.mxu0 %v2238_v0  ;;  %2098 = vmatprep.subr.bf16.mxu1 %v2238_v0 }
  0x1e   :  { %2023 = vmatmul.mubr.msk.bf16.vlgmr.msra.gmra.mrb[0].mxu0 %vm132_vm0, %v2247_v10  ;;  %2053 = vmatmul.mubr.msk.bf16.vlgmr.msra.gmra.mrb[0].mxu1 %vm132_vm0, %v2248_v11 }
  0x1f   :  { %2069 = vmatpush3.bf16.msra.mxu0 %v2238_v0  ;;  %2099 = vmatpush3.bf16.msra.mxu1 %v2238_v0 }
  0x20   :  { %2070 = vmatprep.subr.bf16.mxu0 %v2239_v1  ;;  %2100 = vmatprep.subr.bf16.mxu1 %v2239_v1 }
  0x21   :  { %2026 = vmatprep.mubr.msk.bf16.mxu0 %vm132_vm0, %v2249_v12  ;;  %2056 = vmatprep.mubr.msk.bf16.mxu1 %vm132_vm0, %v2250_v13 }
  0x23   :  { %2071 = vmatpush3.bf16.msra.mxu0 %v2239_v1  ;;  %2101 = vmatpush3.bf16.msra.mxu1 %v2239_v1 }
  0x24   :  { %2072 = vmatprep.subr.bf16.mxu0 %v2240_v2  ;;  %2102 = vmatprep.subr.bf16.mxu1 %v2240_v2 }
  0x26   :  { %2027 = vmatmul.mubr.msk.bf16.gmra.mrb[4].mxu0 %vm132_vm0, %v2251_v14  ;;  %2057 = vmatmul.mubr.msk.bf16.gmra.mrb[4].mxu1 %vm132_vm0, %v2252_v15 }
  0x27   :  { %2073 = vmatpush3.bf16.msra.mxu0 %v2240_v2  ;;  %2103 = vmatpush3.bf16.msra.mxu1 %v2240_v2 }
  0x28   :  { %2074 = vmatprep.subr.bf16.mxu0 %v2332_v3  ;;  %2104 = vmatprep.subr.bf16.mxu1 %v2332_v3 }
  0x29   :  { %2030 = vmatprep.mubr.msk.bf16.mxu0 %vm132_vm0, %v2253_v16  ;;  %2060 = vmatprep.mubr.msk.bf16.mxu1 %vm132_vm0, %v2254_v17 }
  0x2b   :  { %2075 = vmatpush3.bf16.msra.mxu0 %v2332_v3  ;;  %2105 = vmatpush3.bf16.msra.mxu1 %v2332_v3 }
  0x2c   :  { %2076 = vmatprep.subr.bf16.mxu0 %v2242_v6  ;;  %2106 = vmatprep.subr.bf16.mxu1 %v2242_v6 }
  0x2e   :  { %2031 = vmatmul.mubr.msk.bf16.gmra.mrb[8].mxu0 %vm132_vm0, %v2255_v18  ;;  %2061 = vmatmul.mubr.msk.bf16.gmra.mrb[8].mxu1 %vm132_vm0, %v2256_v19 }
  0x2f   :  { %2077 = vmatpush3.bf16.msra.mxu0 %v2242_v6  ;;  %2107 = vmatpush3.bf16.msra.mxu1 %v2242_v6 }
  0x30   :  { %2034 = vmatprep.mubr.msk.bf16.mxu0 %vm132_vm0, %v2257_v20  ;;  %2064 = vmatprep.mubr.msk.bf16.mxu1 %vm132_vm0, %v2258_v21 }
  0x31   :  { %2078 = vmatprep.subr.bf16.mxu0 %v2243_v7  ;;  %2108 = vmatprep.subr.bf16.mxu1 %v2243_v7 }
  0x33   :  { %2079 = vmatpush3.bf16.msra.mxu0 %v2243_v7  ;;  %2109 = vmatpush3.bf16.msra.mxu1 %v2243_v7 }
  0x34   :  { %2234 = vmatprep.subr.msk.bf16.mxu0 %vm157_vm1, %v2355_v8  ;;  %2235 = vmatprep.subr.msk.bf16.mxu1 %vm157_vm1, %v2355_v8 }
  0x36   :  { %2035 = vmatmul.mubr.msk.bf16.gmra.mrb[12].mxu0 %vm132_vm0, %v2259_v22  ;;  %2065 = vmatmul.mubr.msk.bf16.gmra.mrb[12].mxu1 %vm132_vm0, %v2260_v23 }
  0x37   :  { %2081 = vmatpush3.bf16.msra.mxu0 %v159_v9  ;;  %2111 = vmatpush3.bf16.msra.mxu1 %v159_v9 }
  0x38   :  { %2082 = vmatprep.mubr.msk.bf16.mxu0 %vm132_vm0, %v2261_v24  ;;  %2112 = vmatprep.mubr.msk.bf16.mxu1 %vm132_vm0, %v2262_v25 }
  0x39   :  { %2128 = vmatprep.subr.bf16.mxu0 %v2283_v40  ;;  %2134 = vmatprep.subr.bf16.mxu1 %v2283_v40 }
  0x3e   :  { %2083 = vmatmul.mubr.msk.bf16.vlgmr.msra.gmra.mrb[16].mxu0 %vm132_vm0, %v2263_v26  ;;  %2113 = vmatmul.mubr.msk.bf16.vlgmr.msra.gmra.mrb[16].mxu1 %vm132_vm0, %v2264_v27 }
  0x3f   :  { %2086 = vmatprep.mubr.msk.bf16.mxu0 %vm132_vm0, %v2265_v28  ;;  %2116 = vmatprep.mubr.msk.bf16.mxu1 %vm132_vm0, %v2266_v29 }
  0x40   :  { %2129 = vmatpush3.bf16.msra.mxu0 %v875_v42  ;;  %2135 = vmatpush3.bf16.msra.mxu1 %v921_v44 }
  0x41   :  { %2140 = vmatprep.subr.bf16.mxu0 %v2283_v40  ;;  %2146 = vmatprep.subr.bf16.mxu1 %v2283_v40 }
  0x46   :  { %2087 = vmatmul.mubr.msk.bf16.gmra.mrb[20].mxu0 %vm132_vm0, %v2267_v30  ;;  %2117 = vmatmul.mubr.msk.bf16.gmra.mrb[20].mxu1 %vm132_vm0, %v2268_v31 }
  0x47   :  { %2090 = vmatprep.mubr.msk.bf16.mxu0 %vm132_vm0, %v2269_v32  ;;  %2120 = vmatprep.mubr.msk.bf16.mxu1 %vm132_vm0, %v2270_v33 }
  0x4e   :  { %2091 = vmatmul.mubr.msk.bf16.gmra.mrb[24].mxu0 %vm132_vm0, %v2271_v34  ;;  %2121 = vmatmul.mubr.msk.bf16.gmra.mrb[24].mxu1 %vm132_vm0, %v2272_v35 }
  0x4f   :  { %2094 = vmatprep.mubr.msk.bf16.mxu0 %vm132_vm0, %v2273_v36  ;;  %2124 = vmatprep.mubr.msk.bf16.mxu1 %vm132_vm0, %v2274_v37 }
  0x56   :  { %2095 = vmatmul.mubr.msk.bf16.gmra.mrb[28].mxu0 %vm132_vm0, %v2275_v38  ;;  %2125 = vmatmul.mubr.msk.bf16.gmra.mrb[28].mxu1 %vm132_vm0, %v2276_v39 }
  0x57   :  { %2136 = vmatprep.mubr.msk.bf16.mxu1 %vm2284_vm3, %v2283_v40  ;;  %2130 = vmatprep.mubr.msk.bf16.mxu0 %vm2284_vm3, %v2283_v40 }
  0xf1   :  { %v2024_v45 = vpop.f32.mrb[0].mxu0  ;;  %v2054_v46 = vpop.f32.mrb[0].mxu1 }
  0xf2   :  { %v438_v47 = vmax.f32 %v2024_v45, %v2054_v46  ;;  %v195_v48 = vpop.f32.mrb[1].mxu0  ;;  %v373_v49 = vpop.f32.mrb[1].mxu1 }
  0xf3   :  { %v436_v50 = vmax.f32 %v195_v48, %v373_v49  ;;  %v2025_v51 = vpop.f32.mrb[2].mxu0  ;;  %v2055_v52 = vpop.f32.mrb[2].mxu1  ;;  %v1882_v49 = vld [vmem:[%s2759_s2 + $0xc] sm:$0xf] }
  0xf4   :  { %v439_v53 = vmax.f32 %v2025_v51, %v2055_v52  ;;  %v198_v54 = vpop.f32.mrb[3].mxu0  ;;  %v376_v55 = vpop.f32.mrb[3].mxu1 }
  0xf5   :  { %v437_v56 = vmax.f32 %v198_v54, %v376_v55 }
  0xf9   :  { %v2507_v57 = vpop.f32.mrb[4].mxu0  ;;  %v2509_v58 = vpop.f32.mrb[4].mxu1 }
  0xfa   :  { %v442_v59 = vmax.f32 %v2507_v57, %v2509_v58  ;;  %v2513_v60 = vpop.f32.mrb[5].mxu0  ;;  %v2515_v61 = vpop.f32.mrb[5].mxu1 }
  0xfb   :  { %v440_v62 = vmax.f32 %v2513_v60, %v2515_v61  ;;  %v2519_v63 = vpop.f32.mrb[6].mxu0  ;;  %v2521_v0 = vpop.f32.mrb[6].mxu1  ;;  %v1886_v60 = vld [vmem:[%s2759_s2 + $0x14] sm:$0xf] }
  0xfc   :  { %v443_v1 = vmax.f32 %v2519_v63, %v2521_v0  ;;  %v2525_v2 = vpop.f32.mrb[7].mxu0  ;;  %v2527_v3 = vpop.f32.mrb[7].mxu1 }
  0xfd   :  { %v441_v4 = vmax.f32 %v2525_v2, %v2527_v3 }
 0x101   :  { %v2531_v5 = vpop.f32.mrb[8].mxu0  ;;  %v2533_v6 = vpop.f32.mrb[8].mxu1 }
 0x102   :  { %v446_v7 = vmax.f32 %v2531_v5, %v2533_v6  ;;  %v2537_v8 = vpop.f32.mrb[9].mxu0  ;;  %v2539_v9 = vpop.f32.mrb[9].mxu1 }
 0x103   :  { %v444_v10 = vmax.f32 %v2537_v8, %v2539_v9  ;;  %v2543_v11 = vpop.f32.mrb[10].mxu0  ;;  %v2545_v12 = vpop.f32.mrb[10].mxu1  ;;  %v1890_v8 = vld [vmem:[%s2759_s2 + $0x1c] sm:$0xf] }
 0x104   :  { %v447_v13 = vmax.f32 %v2543_v11, %v2545_v12  ;;  %v2549_v14 = vpop.f32.mrb[11].mxu0  ;;  %v2551_v15 = vpop.f32.mrb[11].mxu1 }
 0x105   :  { %v445_v16 = vmax.f32 %v2549_v14, %v2551_v15 }
 0x109   :  { %v2555_v17 = vpop.f32.mrb[12].mxu0  ;;  %v2557_v18 = vpop.f32.mrb[12].mxu1 }
 0x10a   :  { %v450_v19 = vmax.f32 %v2555_v17, %v2557_v18  ;;  %v2561_v20 = vpop.f32.mrb[13].mxu0  ;;  %v2563_v21 = vpop.f32.mrb[13].mxu1 }
 0x10b   :  { %v448_v22 = vmax.f32 %v2561_v20, %v2563_v21  ;;  %v2567_v23 = vpop.f32.mrb[14].mxu0  ;;  %v2569_v24 = vpop.f32.mrb[14].mxu1  ;;  %v1894_v20 = vld [vmem:[%s2759_s2 + $0x24] sm:$0xf] }
 0x10c   :  { %v451_v25 = vmax.f32 %v2567_v23, %v2569_v24  ;;  %v2573_v26 = vpop.f32.mrb[15].mxu0  ;;  %v2575_v27 = vpop.f32.mrb[15].mxu1  ;;  %v1892_v24 = vld [vmem:[%s2759_s2 + $0x20] sm:$0xf] }
 0x10d   :  { %v449_v28 = vmax.f32 %v2573_v26, %v2575_v27  ;;  %v1320_v27 = vsel %vm873_vm2, %v1894_v20, 0 }
 0x111   :  { %v2084_v29 = vpop.f32.mrb[16].mxu0  ;;  %v2114_v30 = vpop.f32.mrb[16].mxu1 }
 0x112   :  { %v810_v31 = vmax.f32 %v2084_v29, %v2114_v30  ;;  %v567_v32 = vpop.f32.mrb[17].mxu0  ;;  %v745_v33 = vpop.f32.mrb[17].mxu1 }
 0x113   :  { %v808_v34 = vmax.f32 %v567_v32, %v745_v33  ;;  %v2085_v35 = vpop.f32.mrb[18].mxu0  ;;  %v2115_v36 = vpop.f32.mrb[18].mxu1 }
 0x114   :  { %v826_v37 = vmax.f32 %v438_v47, %v810_v31  ;;  %v811_v38 = vmax.f32 %v2085_v35, %v2115_v36  ;;  %v570_v39 = vpop.f32.mrb[19].mxu0  ;;  %v748_v41 = vpop.f32.mrb[19].mxu1 }
 0x115   :  { %v824_v42 = vmax.f32 %v436_v50, %v808_v34  ;;  %v809_v43 = vmax.f32 %v570_v39, %v748_v41  ;;  %v1880_v50 = vld [vmem:[%s2759_s2 + $0x8] sm:$0xf]  ;;  %v1020_v34 = vsel %vm873_vm2, %v1882_v49, 0 }
 0x116   :  { %v827_v44 = vmax.f32 %v439_v53, %v811_v38  ;;  %v842_v46 = vmax.f32 %v826_v37, 0.0 }
 0x117   :  { %v825_v45 = vmax.f32 %v437_v56, %v809_v43  ;;  %v840_v51 = vmax.f32 %v824_v42, 0.0  ;;  %v969_v43 = vsel %vm873_vm2, %v1880_v50, 0 }
 0x118   :  { %v843_v48 = vmax.f32 %v827_v44, 0.0 }
 0x119   :  { %v841_v52 = vmax.f32 %v825_v45, 0.0  ;;  %v2088_v54 = vpop.f32.mrb[20].mxu0  ;;  %v2118_v55 = vpop.f32.mrb[20].mxu1  ;;  %v1884_v45 = vld [vmem:[%s2759_s2 + $0x10] sm:$0xf] }
 0x11a   :  { %v857_v29 = vpack.c.bf16 %v843_v48, %v842_v46  ;;  %v814_v30 = vmax.f32 %v2088_v54, %v2118_v55  ;;  %v583_v47 = vpop.f32.mrb[21].mxu0  ;;  %v761_v31 = vpop.f32.mrb[21].mxu1  ;;  %v1120_v54 = vsel %vm873_vm2, %v1886_v60, 0  ;;  %v1898_v60 = vld [vmem:[%s2759_s2 + $0x2c] sm:$0xf] }
 0x11b   :  { %v856_v53 = vpack.c.bf16 %v841_v52, %v840_v51  ;;  %v812_v56 = vmax.f32 %v583_v47, %v761_v31  ;;  %v2089_v32 = vpop.f32.mrb[22].mxu0  ;;  %v2119_v33 = vpop.f32.mrb[22].mxu1 }
 0x11c   :  { %v830_v35 = vmax.f32 %v442_v59, %v814_v30  ;;  %v815_v36 = vmax.f32 %v2089_v32, %v2119_v33  ;;  %v586_v37 = vpop.f32.mrb[23].mxu0  ;;  %v764_v38 = vpop.f32.mrb[23].mxu1  ;;  %v1015_v46 = vrot.slane %v857_v29, 4 }
 0x11d   :  { %v868_v39 = vrot.slane %v856_v53, 4  ;;  %v828_v41 = vmax.f32 %v440_v62, %v812_v56  ;;  %v813_v42 = vmax.f32 %v586_v37, %v764_v38  ;;  %2137 = vmatmul.mubr.msk.bf16.vlgmr.msra.gmra.mrb[32].mxu1 %vm869_vm4, %v856_v53  ;;  %v1069_v56 = vsel %vm873_vm2, %v1884_v45, 0 }
 0x11e   :  { %v831_v44 = vmax.f32 %v443_v1, %v815_v36  ;;  %2147 = vmatpush3.bf16.msra.mxu1 %v1020_v34  ;;  %2148 = vmatprep.mubr.msk.bf16.mxu1 %vm2284_vm3, %v2283_v40  ;;  %v846_v58 = vmax.f32 %v830_v35, 0.0  ;;  %v1220_v38 = vsel %vm873_vm2, %v1890_v8, 0 }
 0x11f   :  { %v829_v57 = vmax.f32 %v441_v4, %v813_v42  ;;  %2131 = vmatmul.mubr.msk.bf16.vlgmr.msra.gmra.mrb[32].mxu0 %vm869_vm4, %v868_v39  ;;  %2158 = vmatprep.subr.bf16.mxu1 %v2283_v40  ;;  %v844_v61 = vmax.f32 %v828_v41, 0.0 }
 0x120   :  { %v847_v59 = vmax.f32 %v831_v44, 0.0  ;;  %2141 = vmatpush3.bf16.msra.mxu0 %v969_v43  ;;  %2142 = vmatprep.mubr.msk.bf16.mxu0 %vm2284_vm3, %v2283_v40 }
 0x121   :  { %v845_v62 = vmax.f32 %v829_v57, 0.0  ;;  %v2092_v63 = vpop.f32.mrb[24].mxu0  ;;  %v2122_v0 = vpop.f32.mrb[24].mxu1  ;;  %2152 = vmatprep.subr.bf16.mxu0 %v2283_v40 }
 0x122   :  { %v2610_v1 = vpack.c.bf16 %v847_v59, %v846_v58  ;;  %v818_v2 = vmax.f32 %v2092_v63, %v2122_v0  ;;  %v599_v3 = vpop.f32.mrb[25].mxu0  ;;  %v777_v4 = vpop.f32.mrb[25].mxu1  ;;  %v1420_v63 = vsel %vm873_vm2, %v1898_v60, 0 }
 0x123   :  { %v858_v48 = vpack.c.bf16 %v845_v62, %v844_v61  ;;  %v816_v49 = vmax.f32 %v599_v3, %v777_v4  ;;  %v2093_v51 = vpop.f32.mrb[26].mxu0  ;;  %v2123_v52 = vpop.f32.mrb[26].mxu1  ;;  %v1896_v61 = vld [vmem:[%s2759_s2 + $0x28] sm:$0xf] }
 0x124   :  { %v834_v55 = vmax.f32 %v446_v7, %v818_v2  ;;  %v819_v30 = vmax.f32 %v2093_v51, %v2123_v52  ;;  %v602_v47 = vpop.f32.mrb[27].mxu0  ;;  %v780_v31 = vpop.f32.mrb[27].mxu1  ;;  %v1369_v0 = vsel %vm873_vm2, %v1896_v61, 0  ;;  %v1900_v2 = vld [vmem:[%s2759_s2 + $0x30] sm:$0xf] }
 0x125   :  { %v832_v50 = vmax.f32 %v444_v10, %v816_v49  ;;  %v817_v53 = vmax.f32 %v602_v47, %v780_v31  ;;  %2149 = vmatmul.mubr.msk.bf16.vlgmr.msra.gmra.mrb[36].mxu1 %vm869_vm4, %v1015_v46  ;;  %v1115_v33 = vrot.slane %v858_v48, 4  ;;  %v1469_v45 = vsel %vm873_vm2, %v1900_v2, 0  ;;  %v1906_v46 = vld [vmem:[%s2759_s2 + $0x3c] sm:$0xf] }
 0x126   :  { %v835_v32 = vmax.f32 %v447_v13, %v819_v30  ;;  %2159 = vmatpush3.bf16.msra.mxu1 %v1120_v54  ;;  %2160 = vmatprep.mubr.msk.bf16.mxu1 %vm2284_vm3, %v2283_v40  ;;  %v850_v6 = vmax.f32 %v834_v55, 0.0  ;;  %v1620_v51 = vsel %vm873_vm2, %v1906_v46, 0  ;;  %v2277_v55 = vld [vmem:[%s2760_s4] sm:$0xff]   ;;  %v2278_v30 = vld [vmem:[%s2760_s4 + $0x8] sm:$0xff]  }
 0x127   :  { %v833_v5 = vmax.f32 %v445_v16, %v817_v53  ;;  %2143 = vmatmul.mubr.msk.bf16.vlgmr.msra.gmra.mrb[36].mxu0 %vm869_vm4, %v857_v29  ;;  %2170 = vmatprep.subr.bf16.mxu1 %v2283_v40  ;;  %v848_v9 = vmax.f32 %v832_v50, 0.0  ;;  %v1888_v29 = vld [vmem:[%s2759_s2 + $0x18] sm:$0xf] }
 0x128   :  { %v851_v7 = vmax.f32 %v835_v32, 0.0  ;;  %2153 = vmatpush3.bf16.msra.mxu0 %v1069_v56  ;;  %2154 = vmatprep.mubr.msk.bf16.mxu0 %vm2284_vm3, %v2283_v40  ;;  %v1169_v58 = vsel %vm873_vm2, %v1888_v29, 0 }
 0x129   :  { %v849_v10 = vmax.f32 %v833_v5, 0.0  ;;  %v2096_v11 = vpop.f32.mrb[28].mxu0  ;;  %v2126_v12 = vpop.f32.mrb[28].mxu1  ;;  %2164 = vmatprep.subr.bf16.mxu0 %v2283_v40 }
 0x12a   :  { %v2640_v13 = vpack.c.bf16 %v851_v7, %v850_v6  ;;  %v822_v14 = vmax.f32 %v2096_v11, %v2126_v12  ;;  %v615_v15 = vpop.f32.mrb[29].mxu0  ;;  %v793_v16 = vpop.f32.mrb[29].mxu1 }
 0x12b   :  { %v860_v34 = vpack.c.bf16 %v849_v10, %v848_v9  ;;  %v820_v35 = vmax.f32 %v615_v15, %v793_v16  ;;  %v2097_v36 = vpop.f32.mrb[30].mxu0  ;;  %v2127_v37 = vpop.f32.mrb[30].mxu1 }
 0x12c   :  { %v838_v39 = vmax.f32 %v450_v19, %v822_v14  ;;  %v823_v41 = vmax.f32 %v2097_v36, %v2127_v37  ;;  %v618_v42 = vpop.f32.mrb[31].mxu0  ;;  %v796_v43 = vpop.f32.mrb[31].mxu1  ;;  %v1415_v3 = vrot.slane %v2640_v13, 4 }
 0x12d   :  { %v836_v44 = vmax.f32 %v448_v22, %v820_v35  ;;  %v821_v57 = vmax.f32 %v618_v42, %v796_v43  ;;  %2161 = vmatmul.mubr.msk.bf16.vlgmr.msra.gmra.mrb[40].mxu1 %vm869_vm4, %v1115_v33  ;;  %v1315_v62 = vrot.slane %v860_v34, 4 }
 0x12e   :  { %v839_v59 = vmax.f32 %v451_v25, %v823_v41  ;;  %2171 = vmatpush3.bf16.msra.mxu1 %v1220_v38  ;;  %2172 = vmatprep.mubr.msk.bf16.mxu1 %vm2284_vm3, %v2283_v40  ;;  %v854_v18 = vmax.f32 %v838_v39, 0.0  ;;  %v1215_v25 = vrot.slane %v2610_v1, 4 }
 0x12f   :  { %v837_v17 = vmax.f32 %v449_v28, %v821_v57  ;;  %2155 = vmatmul.mubr.msk.bf16.vlgmr.msra.gmra.mrb[40].mxu0 %vm869_vm4, %v858_v48  ;;  %2182 = vmatprep.subr.bf16.mxu1 %v2283_v40  ;;  %v852_v21 = vmax.f32 %v836_v44, 0.0  ;;  %v1269_v28 = vsel %vm873_vm2, %v1892_v24, 0  ;;  %v1904_v48 = vld [vmem:[%s2759_s2 + $0x38] sm:$0xf] }
 0x130   :  { %v855_v19 = vmax.f32 %v839_v59, 0.0  ;;  %2165 = vmatpush3.bf16.msra.mxu0 %v1169_v58  ;;  %2166 = vmatprep.mubr.msk.bf16.mxu0 %vm2284_vm3, %v2283_v40  ;;  %v1569_v52 = vsel %vm873_vm2, %v1904_v48, 0 }
 0x131   :  { %v853_v22 = vmax.f32 %v837_v17, 0.0  ;;  %2176 = vmatprep.subr.bf16.mxu0 %v2283_v40 }
 0x132   :  { %v863_v23 = vpack.c.bf16 %v855_v19, %v854_v18 }
 0x133   :  { %v862_v26 = vpack.c.bf16 %v853_v22, %v852_v21 }
 0x134   :  { %v1615_v54 = vrot.slane %v863_v23, 4 }
 0x135   :  { %2173 = vmatmul.mubr.msk.bf16.vlgmr.msra.gmra.mrb[44].mxu1 %vm869_vm4, %v1215_v25  ;;  %v1515_v49 = vrot.slane %v862_v26, 4 }
 0x136   :  { %2183 = vmatpush3.bf16.msra.mxu1 %v1320_v27  ;;  %2184 = vmatprep.mubr.msk.bf16.mxu1 %vm2284_vm3, %v2283_v40 }
 0x137   :  { %2167 = vmatmul.mubr.msk.bf16.vlgmr.msra.gmra.mrb[44].mxu0 %vm869_vm4, %v2610_v1  ;;  %2194 = vmatprep.subr.bf16.mxu1 %v2283_v40  ;;  %v1902_v1 = vld [vmem:[%s2759_s2 + $0x34] sm:$0xf] }
 0x138   :  { %2177 = vmatpush3.bf16.msra.mxu0 %v1269_v28  ;;  %2178 = vmatprep.mubr.msk.bf16.mxu0 %vm2284_vm3, %v2283_v40  ;;  %v1520_v4 = vsel %vm873_vm2, %v1902_v1, 0 }
 0x139   :  { %2188 = vmatprep.subr.bf16.mxu0 %v2283_v40 }
 0x13d   :  { %2185 = vmatmul.mubr.msk.bf16.vlgmr.msra.gmra.mrb[48].mxu1 %vm869_vm4, %v1315_v62 }
 0x13e   :  { %2195 = vmatpush3.bf16.msra.mxu1 %v1420_v63  ;;  %2196 = vmatprep.mubr.msk.bf16.mxu1 %vm2284_vm3, %v2283_v40 }
 0x13f   :  { %2179 = vmatmul.mubr.msk.bf16.vlgmr.msra.gmra.mrb[48].mxu0 %vm869_vm4, %v860_v34  ;;  %2206 = vmatprep.subr.bf16.mxu1 %v2283_v40 }
 0x140   :  { %2189 = vmatpush3.bf16.msra.mxu0 %v1369_v0  ;;  %2190 = vmatprep.mubr.msk.bf16.mxu0 %vm2284_vm3, %v2283_v40 }
 0x141   :  { %2200 = vmatprep.subr.bf16.mxu0 %v2283_v40 }
 0x145   :  { %2197 = vmatmul.mubr.msk.bf16.vlgmr.msra.gmra.mrb[52].mxu1 %vm869_vm4, %v1415_v3 }
 0x146   :  { %2207 = vmatpush3.bf16.msra.mxu1 %v1520_v4  ;;  %2208 = vmatprep.mubr.msk.bf16.mxu1 %vm2284_vm3, %v2283_v40 }
 0x147   :  { %2191 = vmatmul.mubr.msk.bf16.vlgmr.msra.gmra.mrb[52].mxu0 %vm869_vm4, %v2640_v13  ;;  %2218 = vmatprep.subr.bf16.mxu1 %v2283_v40 }
 0x148   :  { %2201 = vmatpush3.bf16.msra.mxu0 %v1469_v45  ;;  %2202 = vmatprep.mubr.msk.bf16.mxu0 %vm2284_vm3, %v2283_v40 }
 0x149   :  { %2212 = vmatprep.subr.bf16.mxu0 %v2283_v40 }
 0x14d   :  { %2209 = vmatmul.mubr.msk.bf16.vlgmr.msra.gmra.mrb[56].mxu1 %vm869_vm4, %v1515_v49 }
 0x14e   :  { %2219 = vmatpush3.bf16.msra.mxu1 %v1620_v51  ;;  %2220 = vmatprep.mubr.msk.bf16.mxu1 %vm2284_vm3, %v2283_v40 }
 0x14f   :  { %2203 = vmatmul.mubr.msk.bf16.vlgmr.msra.gmra.mrb[56].mxu0 %vm869_vm4, %v862_v26 }
 0x150   :  { %2213 = vmatpush3.bf16.msra.mxu0 %v1569_v52  ;;  %2214 = vmatprep.mubr.msk.bf16.mxu0 %vm2284_vm3, %v2283_v40 }
 0x151   :  { %2224 = vmatprep.subr.bf16.mxu0 %v2283_v40 }
 0x155   :  { %2221 = vmatmul.mubr.msk.bf16.vlgmr.msra.gmra.mrb[60].mxu1 %vm869_vm4, %v1615_v54 }
 0x157   :  { %2215 = vmatmul.mubr.msk.bf16.vlgmr.msra.gmra.mrb[60].mxu0 %vm869_vm4, %v863_v23 }
 0x158   :  { %2228 = vmatprep.mubr.msk.bf16.mxu0 %vm2284_vm3, %v2283_v40  ;;  %2225 = vmatpush3.bf16.msra.mxu0 %v2277_v55 }
 0x159   :  { %2226 = vmatprep.subr.bf16.mxu0 %v2283_v40 }
 0x15c   :  { %2227 = vmatpush3.bf16.msra.mxu0 %v2278_v30 }
 0x1f0   :  { %v957_v47 = vpop.f32.mrb[32].mxu1 }
 0x1f1   :  { %v2138_v31 = vpop.f32.mrb[33].mxu1 }
 0x1f2   :  { %v911_v50 = vpop.f32.mrb[32].mxu0  ;;  %v960_v53 = vpop.f32.mrb[34].mxu1 }
 0x1f3   :  { %v958_v56 = vadd.f32 %v957_v47, %v911_v50  ;;  %v2132_v32 = vpop.f32.mrb[33].mxu0  ;;  %v2139_v5 = vpop.f32.mrb[35].mxu1 }
 0x1f4   :  { %v914_v6 = vpop.f32.mrb[34].mxu0 }
 0x1f5   :  { %v2133_v7 = vpop.f32.mrb[35].mxu0 }
 0x1f8   :  { %v1056_v8 = vpop.f32.mrb[36].mxu1 }
 0x1f9   :  { %v2150_v9 = vpop.f32.mrb[37].mxu1 }
 0x1fa   :  { %v1005_v10 = vpop.f32.mrb[36].mxu0  ;;  %v1059_v11 = vpop.f32.mrb[38].mxu1 }
 0x1fb   :  { %v1011_v12 = vadd.f32 %v1005_v10, %v958_v56  ;;  %v2144_v40 = vpop.f32.mrb[37].mxu0  ;;  %v2151_v13 = vpop.f32.mrb[39].mxu1  ;;  %v1908_v11 = vld [vmem:[%s2761_s3] ss:$0 sm:$0xff] }
 0x1fc   :  { %v1008_v14 = vpop.f32.mrb[38].mxu0 }
 0x1fd   :  { %v2145_v15 = vpop.f32.mrb[39].mxu0  ;;  %v1062_v16 = vadd.f32 %v1056_v8, %v1011_v12 }
 0x200   :  { %v1156_v29 = vpop.f32.mrb[40].mxu1 }
 0x201   :  { %v2162_v33 = vpop.f32.mrb[41].mxu1 }
 0x202   :  { %v1105_v34 = vpop.f32.mrb[40].mxu0  ;;  %v1159_v35 = vpop.f32.mrb[42].mxu1 }
 0x203   :  { %v1111_v36 = vadd.f32 %v1105_v34, %v1062_v16  ;;  %v2156_v37 = vpop.f32.mrb[41].mxu0  ;;  %v2163_v38 = vpop.f32.mrb[43].mxu1 }
 0x204   :  { %v1108_v39 = vpop.f32.mrb[42].mxu0 }
 0x205   :  { %v2157_v41 = vpop.f32.mrb[43].mxu0  ;;  %v1162_v42 = vadd.f32 %v1156_v29, %v1111_v36  ;;  %v1909_v29 = vld [vmem:[%s2762_s5] ss:$0 sm:$0xff] }
 0x208   :  { %v1256_v43 = vpop.f32.mrb[44].mxu1 }
 0x209   :  { %v2174_v44 = vpop.f32.mrb[45].mxu1 }
 0x20a   :  { %v1205_v57 = vpop.f32.mrb[44].mxu0  ;;  %v1259_v58 = vpop.f32.mrb[46].mxu1 }
 0x20b   :  { %v1211_v59 = vadd.f32 %v1205_v57, %v1162_v42  ;;  %v2168_v17 = vpop.f32.mrb[45].mxu0  ;;  %v2175_v18 = vpop.f32.mrb[47].mxu1 }
 0x20c   :  { %v1208_v19 = vpop.f32.mrb[46].mxu0 }
 0x20d   :  { %v2169_v20 = vpop.f32.mrb[47].mxu0  ;;  %v1262_v21 = vadd.f32 %v1256_v43, %v1211_v59 }
 0x210   :  { %v1356_v22 = vpop.f32.mrb[48].mxu1 }
 0x211   :  { %v2186_v23 = vpop.f32.mrb[49].mxu1 }
 0x212   :  { %v1305_v24 = vpop.f32.mrb[48].mxu0  ;;  %v1359_v25 = vpop.f32.mrb[50].mxu1 }
 0x213   :  { %v1311_v26 = vadd.f32 %v1305_v24, %v1262_v21  ;;  %v2180_v27 = vpop.f32.mrb[49].mxu0  ;;  %v2187_v28 = vpop.f32.mrb[51].mxu1 }
 0x214   :  { %v1308_v60 = vpop.f32.mrb[50].mxu0 }
 0x215   :  { %v2181_v61 = vpop.f32.mrb[51].mxu0  ;;  %v1362_v62 = vadd.f32 %v1356_v22, %v1311_v26 }
 0x218   :  { %v1456_v63 = vpop.f32.mrb[52].mxu1 }
 0x219   :  { %v2198_v0 = vpop.f32.mrb[53].mxu1 }
 0x21a   :  { %v1405_v1 = vpop.f32.mrb[52].mxu0  ;;  %v1459_v2 = vpop.f32.mrb[54].mxu1 }
 0x21b   :  { %v1411_v3 = vadd.f32 %v1405_v1, %v1362_v62  ;;  %v2192_v4 = vpop.f32.mrb[53].mxu0  ;;  %v2199_v45 = vpop.f32.mrb[55].mxu1 }
 0x21c   :  { %v1408_v46 = vpop.f32.mrb[54].mxu0 }
 0x21d   :  { %v2193_v48 = vpop.f32.mrb[55].mxu0  ;;  %v1462_v49 = vadd.f32 %v1456_v63, %v1411_v3 }
 0x220   :  { %v1556_v51 = vpop.f32.mrb[56].mxu1 }
 0x221   :  { %v2210_v52 = vpop.f32.mrb[57].mxu1 }
 0x222   :  { %v1505_v54 = vpop.f32.mrb[56].mxu0  ;;  %v1559_v55 = vpop.f32.mrb[58].mxu1 }
 0x223   :  { %v1511_v30 = vadd.f32 %v1505_v54, %v1462_v49  ;;  %v2204_v47 = vpop.f32.mrb[57].mxu0  ;;  %v2211_v31 = vpop.f32.mrb[59].mxu1 }
 0x224   :  { %v1508_v50 = vpop.f32.mrb[58].mxu0 }
 0x225   :  { %v2205_v53 = vpop.f32.mrb[59].mxu0  ;;  %v1562_v56 = vadd.f32 %v1556_v51, %v1511_v30 }
 0x228   :  { %v1656_v32 = vpop.f32.mrb[60].mxu1 }
 0x229   :  { %v2222_v5 = vpop.f32.mrb[61].mxu1 }
 0x22a   :  { %v1605_v6 = vpop.f32.mrb[60].mxu0  ;;  %v1659_v7 = vpop.f32.mrb[62].mxu1 }
 0x22b   :  { %v1611_v8 = vadd.f32 %v1605_v6, %v1562_v56  ;;  %v2216_v9 = vpop.f32.mrb[61].mxu0  ;;  %v2223_v10 = vpop.f32.mrb[63].mxu1 }
 0x22c   :  { %v1608_v12 = vpop.f32.mrb[62].mxu0 }
 0x22d   :  { %v1662_v40 = vadd.f32 %v1656_v32, %v1611_v8  ;;  %v2217_v13 = vpop.f32.mrb[63].mxu0 }
 0x22f   :  { %v1670_v14 = vadd.f32 %v1908_v11, %v1662_v40 }
 0x231   :  { %v1671_v15 = vmax.f32 %v1670_v14, 0.0 }
 0x233   :  { %v1672_v16 = vpack.c.bf16 %v1671_v15, %v1671_v15 }
 0x235   :  { %2229 = vmatmul.mubr.msk.bf16.vlgmr.msra.gmra.mrb[64].mxu0 %vm1696_vm5, %v1672_v16 }
 0x308   :  { %v1734_v33 = vpop.f32.mrb[64].mxu0 }
 0x309   :  { %v1735_v34 = vadd.f32 %v1909_v29, %v1734_v33  ;;  %v2230_v35 = vpop.f32.mrb[65].mxu0 }
 0x30a   :  { %v1737_v36 = vpop.f32.mrb[66].mxu0 }
 0x30b   :  { %v2231_v37 = vpop.f32.mrb[67].mxu0  ;;  %v1741_v38 = vsel %vm1740_vm6, %v1735_v34, -inf }
 0x30c   :  { %1742 = vmax.xlane.f32.xlu0 %v1741_v38 }
 0x399   :  { %v1743_v39 = vpop.xlane.xlu0 %1742 }
 0x39a   :  { %v1744_v41 = vsub.f32 %v1735_v34, %v1743_v39 }
 0x39c   :  { %v1745_v42 = vmul.f32 1.442695, %v1744_v41 }
 0x39e   :  { %2279 = vpow2.f32 %v1745_v42 }
 0x3a8   :  { %v2280_v43 = vpop.eup %2279 }
 0x3a9   :  { %v1747_v44 = vsel %vm1740_vm6, %v2280_v43, 0.0 }
 0x3aa   :  { %1748 = vadd.xlane.f32.xlu0 %v1747_v44 }
 0x437   :  { %v1749_v57 = vpop.xlane.xlu0 %1748 }
 0x438   :  { %2281 = vlog2.f32 %v1749_v57 }
 0x442   :  { %v2282_v58 = vpop.eup %2281 }
 0x443   :  { %v1751_v59 = vmul.f32 0.6931472, %v2282_v58 }
 0x445   :  { %v1752_v17 = vsub.f32 %v1744_v41, %v1751_v59 }
 0x447   :  { %1753 = vst.msk [vmem:[%s2763_s6] sm:$0xff] %vm1740_vm6, %v1752_v17 }

</bundles_post_ra>
